<compile_context>
chip_gen: v6e
topology: v6e:2x2x1
jax: 0.10.0
libtpu: 0.0.40
codegen_flags: <defaults>
</compile_context>

<pallas_src>
import jax
import jax.numpy as jnp
import numpy as np
from jax.experimental import pallas as pl
from jax.experimental.pallas import tpu as pltpu

FC_DIM = 32      # TODO(synk): `fc_dim` is an undefined global in the reference module.
C1P = 32         # conv1 out channels (24) padded to 32 lanes (kept narrow for conv2 K)
C2P = 128        # conv2 out channels (30) padded to a full lane tile
BATCH_TILE = 64  # per-grid-step batch tile (review: ~48-64 for v7x, larger OK on v5e/v6e)
# TODO(synk): torch.nn.Dropout is identity at inference (eval mode); not applied.


def _round8(n):
    return ((n + 7) // 8) * 8


# ---------------------------------------------------------------------------
# The single fused Pallas kernel (one batch tile per grid step)
# ---------------------------------------------------------------------------
def _fused_kernel(xs_ref, w1_ref, w2_ref, wf1_ref, b1_ref, wf2_ref, b2_ref, o_ref):
    """GeoGuesser forward for one batch tile, entirely in VMEM.

    xs_ref : (4, BT, 64, K1)  conv1 im2col LHS, one block per 2x2 pool offset
    w1_ref : (K1, 32)         conv1 weight slab (9*Cin rows, 24->32 out lanes)
    w2_ref : (288, 128)       conv2 weight slab (9 taps x 32 lanes, 30->128 out lanes)
    wf1_ref: (512, 128)       fc1 weight (4 pooled positions x 128 lanes, fc_dim cols)
    b1_ref : (1, 128)  wf2_ref: (128, 128)  b2_ref: (1, 128)
    o_ref  : (BT, 128)        lane-dense output; lanes 0/1 hold lat/long
    """
    bt = xs_ref.shape[1]
    k1 = xs_ref.shape[3]
    c1p = w1_ref.shape[1]          # 32
    c2p = w2_ref.shape[1]          # 128
    r = bt * 64                    # rows per conv matmul: (b, h, w) over the 8x8 grid

    # ---- Conv1 (3x3 'same') + ReLU + MaxPool(2,2): one matmul + max over offsets ----
    lhs1 = xs_ref[...].reshape(4 * r, k1)
    a = jnp.dot(lhs1, w1_ref[...], preferred_element_type=jnp.float32)
    a = jnp.maximum(a, 0.0).reshape(4, r, c1p)              # ReLU (commutes with max)
    y1 = jnp.maximum(jnp.maximum(a[0], a[1]), jnp.maximum(a[2], a[3]))
    y1 = y1.reshape(bt, 8, 8, c1p)                           # (BT,8,8,32), 24 real lanes

    # ---- Conv2 (3x3 'same') + ReLU: in-kernel im2col -> one K=288 matmul ------------
    zrow = jnp.zeros((bt, 1, 8, c1p), jnp.float32)
    yh = jnp.concatenate([zrow, y1, zrow], axis=1)           # (BT,10,8,32)
    zcol = jnp.zeros((bt, 10, 1, c1p), jnp.float32)
    yp = jnp.concatenate([zcol, yh, zcol], axis=2)           # (BT,10,10,32) halo value
    taps = [yp[:, kh:kh + 8, kw:kw + 8, :].reshape(r, c1p)
            for kh in range(3) for kw in range(3)]
    lhs2 = jnp.concatenate(taps, axis=-1)                    # (R, 288)
    y2 = jnp.maximum(jnp.dot(lhs2, w2_ref[...], preferred_element_type=jnp.float32),
                     0.0)
    y2 = y2.reshape(bt, 8, 8, c2p)
    # (module applies MaxPool(4,4) then another ReLU; post-pool ReLU is a no-op)

    # ---- MaxPool(4,4) + Flatten + Linear + ReLU + (Dropout=id) + Linear -------------
    pooled = []
    for hb in range(2):
        for wb in range(2):
            blk = y2[:, 4 * hb:4 * hb + 4, 4 * wb:4 * wb + 4, :]     # (BT,4,4,128)
            pooled.append(jnp.max(jnp.max(blk, axis=1), axis=1))     # (BT,128)
    feat = jnp.concatenate(pooled, axis=-1)                           # (BT,512)
    hidden = jnp.maximum(
        jnp.dot(feat, wf1_ref[...], preferred_element_type=jnp.float32) + b1_ref[...],
        0.0)                                                          # (BT,128)
    z = jnp.dot(hidden, wf2_ref[...],
                preferred_element_type=jnp.float32) + b2_ref[...]     # (BT,128)

    # ---- Tanh + ScaleToLatLong([90, 180]); scale built in-kernel (no captured const)
    lane = jax.lax.broadcasted_iota(jnp.int32, z.shape, 1)
    scale = jnp.where(lane == 0, 90.0, jnp.where(lane == 1, 180.0, 0.0))
    o_ref[...] = jnp.tanh(z) * scale


# ---------------------------------------------------------------------------
# One-time weight preparation (folds flatten permutation + fc transposes in)
# ---------------------------------------------------------------------------
def prepare_params(params, pooled_hw=(2, 2)):
    c1out, cin = params["conv1_w"].shape[0], params["conv1_w"].shape[1]
    c2out, c2in = params["conv2_w"].shape[0], params["conv2_w"].shape[1]
    fc_dim = params["fc1_w"].shape[0]
    ph, pw = pooled_hw
    k1p = _round8(9 * cin)

    # conv1: (cout,cin,3,3) -> rows ordered (kh,kw,cin), cols = cout padded to 32
    w1 = jnp.transpose(params["conv1_w"], (2, 3, 1, 0)).reshape(9 * cin, c1out)
    w1 = jnp.pad(w1, ((0, k1p - 9 * cin), (0, C1P - c1out)))

    # conv2: per-tap 32-lane input chunks (24 real), cout padded to 128
    w2 = jnp.transpose(params["conv2_w"], (2, 3, 1, 0))                  # (3,3,24,30)
    w2 = jnp.pad(w2, ((0, 0), (0, 0), (0, C1P - c2in), (0, C2P - c2out)))
    w2 = w2.reshape(9 * C1P, C2P)

    # fc1: torch NCHW flatten index = c*(ph*pw) + h*pw + w; kernel feeds pos-major
    # 128-lane chunks (pos = h*pw + w), so fc1 weight rows are [pos*128 + c].
    f1 = params["fc1_w"].reshape(fc_dim, c2out, ph, pw)
    wf1 = jnp.transpose(f1, (2, 3, 1, 0))                                # (ph,pw,30,fc)
    wf1 = jnp.pad(wf1, ((0, 0), (0, 0), (0, C2P - c2out), (0, 128 - fc_dim)))
    wf1 = wf1.reshape(ph * pw * C2P, 128)

    b1 = jnp.pad(params["fc1_b"].reshape(1, -1), ((0, 0), (0, 128 - fc_dim)))
    wf2 = jnp.pad(jnp.transpose(params["fc2_w"]), ((0, 128 - fc_dim), (0, 128 - 2)))
    b2 = jnp.pad(params["fc2_b"].reshape(1, -1), ((0, 0), (0, 128 - 2)))
    return dict(w1=w1, w2=w2, wf1=wf1, b1=b1, wf2=wf2, b2=b2)


# ---------------------------------------------------------------------------
# Forward wrapper (XLA glue: tiny conv1 im2col + batch padding + lane slice)
# ---------------------------------------------------------------------------
def _im2col_conv1(x_nchw, k1p):
    """(B,C,16,16) -> (4, B, 64, k1p): per pool offset, the 3x3 im2col LHS rows."""
    B, C, _, _ = x_nchw.shape
    x = jnp.transpose(x_nchw, (0, 2, 3, 1)).astype(jnp.float32)          # NHWC
    xp = jnp.pad(x, ((0, 0), (1, 1), (1, 1), (0, 0)))                    # (B,18,18,C)
    blocks = []
    for dy in range(2):
        for dx in range(2):
            taps = [xp[:, dy + kh:dy + kh + 16:2, dx + kw:dx + kw + 16:2, :]
                    for kh in range(3) for kw in range(3)]               # 9x(B,8,8,C)
            blocks.append(jnp.concatenate(taps, axis=-1))                # (B,8,8,9C)
    xs = jnp.stack(blocks, axis=0)                                       # (4,B,8,8,9C)
    xs = jnp.pad(xs, ((0, 0),) * 4 + ((0, k1p - 9 * C),))
    return xs.reshape(4, B, 64, k1p)


@jax.jit
def geoguesser_logits(x_nchw, prepped):
    B, _, H, W = x_nchw.shape
    assert (H, W) == (16, 16), "this fused kernel is specialised for 16x16 inputs"
    k1p = prepped["w1"].shape[0]

    bt = min(BATCH_TILE, B)
    n_tiles = -(-B // bt)
    bp = n_tiles * bt
    if bp != B:
        x_nchw = jnp.pad(x_nchw, ((0, bp - B), (0, 0), (0, 0), (0, 0)))

    xs = _im2col_conv1(x_nchw, k1p)                                      # (4,Bp,64,k1p)

    out = pl.pallas_call(
        _fused_kernel,
        out_shape=jax.ShapeDtypeStruct((bp, 128), jnp.float32),
        grid=(n_tiles,),
        in_specs=[
            pl.BlockSpec((4, bt, 64, k1p), lambda i: (0, i, 0, 0)),      # batch-tiled
            pl.BlockSpec(prepped["w1"].shape, lambda i: (0, 0)),         # weights stay
            pl.BlockSpec(prepped["w2"].shape, lambda i: (0, 0)),         #   resident
            pl.BlockSpec(prepped["wf1"].shape, lambda i: (0, 0)),
            pl.BlockSpec(prepped["b1"].shape, lambda i: (0, 0)),
            pl.BlockSpec(prepped["wf2"].shape, lambda i: (0, 0)),
            pl.BlockSpec(prepped["b2"].shape, lambda i: (0, 0)),
        ],
        out_specs=pl.BlockSpec((bt, 128), lambda i: (i, 0)),
        compiler_params=pltpu.CompilerParams(
            dimension_semantics=("parallel",),
            vmem_limit_bytes=48 * 1024 * 1024),
    )(xs, prepped["w1"], prepped["w2"], prepped["wf1"], prepped["b1"],
      prepped["wf2"], prepped["b2"])
    return out[:B, :2]


def geoguesser_forward(x_nchw, prepped, y=None):
    logits = geoguesser_logits(x_nchw, prepped)
    loss = None
    if y is not None:
        lat1, lon1 = logits[:, 0], logits[:, 1]
        lat2, lon2 = y[:, 0], y[:, 1]
        # As in the reference module, degrees go straight into sin/cos (no deg->rad).
        # The clip only guards |c| > 1 from float rounding (would NaN arccos).
        c = (jnp.sin(lat1) * jnp.sin(lat2)
             + jnp.cos(lat1) * jnp.cos(lat2) * jnp.cos(lon2 - lon1))
        loss = jnp.mean(jnp.arccos(jnp.clip(c, -1.0, 1.0)) * 6371.0)
    return logits, loss


# ---------------------------------------------------------------------------
# Pure-JAX reference (for correctness check)
# ---------------------------------------------------------------------------
def reference_forward(x_nchw, params):
    x = jnp.transpose(x_nchw, (0, 2, 3, 1))

    def conv(a, w):
        return jax.lax.conv_general_dilated(
            a, jnp.transpose(w, (2, 3, 1, 0)), (1, 1), "SAME",
            dimension_numbers=("NHWC", "HWIO", "NHWC"))

    def maxpool(a, k):
        return jax.lax.reduce_window(a, -jnp.inf, jax.lax.max,
                                     (1, k, k, 1), (1, k, k, 1), "VALID")

    a = maxpool(jnp.maximum(conv(x, params["conv1_w"]), 0.0), 2)
    a = maxpool(jnp.maximum(conv(a, params["conv2_w"]), 0.0), 4)
    a = jnp.maximum(a, 0.0)
    B = x.shape[0]
    feat = jnp.transpose(a, (0, 3, 1, 2)).reshape(B, -1)
    h = jnp.maximum(feat @ params["fc1_w"].T + params["fc1_b"], 0.0)
    z = h @ params["fc2_w"].T + params["fc2_b"]
    return jnp.tanh(z) * jnp.array([90.0, 180.0])


if __name__ == "__main__":
    key = jax.random.PRNGKey(0)
    B, C, H, W = 2, 4, 16, 16            # im_res = (4, 16, 16)
    ks = jax.random.split(key, 8)

    x = jax.random.normal(ks[0], (B, C, H, W), jnp.float32)
    y_gps = jnp.stack(
        [jax.random.uniform(ks[1], (B,), minval=-90.0, maxval=90.0),
         jax.random.uniform(ks[2], (B,), minval=-180.0, maxval=180.0)], axis=1)

    flat_dim = 30 * (H // 8) * (W // 8)  # 30 * 2 * 2 = 120 for these shapes
    params = {
        "conv1_w": 0.1 * jax.random.normal(ks[3], (24, C, 3, 3), jnp.float32),
        "conv2_w": 0.1 * jax.random.normal(ks[4], (30, 24, 3, 3), jnp.float32),
        "fc1_w":   0.1 * jax.random.normal(ks[5], (FC_DIM, flat_dim), jnp.float32),
        "fc1_b":   0.01 * jax.random.normal(ks[6], (FC_DIM,), jnp.float32),
        "fc2_w":   0.1 * jax.random.normal(ks[7], (2, FC_DIM), jnp.float32),
        "fc2_b":   jnp.zeros((2,), jnp.float32),
    }

    prepped = prepare_params(params, pooled_hw=(H // 8, W // 8))

    logits, loss = geoguesser_forward(x, prepped, y_gps)
    jax.block_until_ready(logits)
    jax.block_until_ready(loss)

    ref = reference_forward(x, params)
    np.testing.assert_allclose(np.asarray(logits), np.asarray(ref),
                               rtol=5e-3, atol=5e-2)
    print("KERNEL_OK")
</pallas_src>

<mosaic_0001>
module attributes {stable_mosaic.version = 11 : i64} {
  func.func @_fused_kernel(%arg0: i32, %arg1: memref<4x2x64x40xf32, #tpu.memory_space<vmem>>, %arg2: memref<40x32xf32, #tpu.memory_space<vmem>>, %arg3: memref<288x128xf32, #tpu.memory_space<vmem>>, %arg4: memref<512x128xf32, #tpu.memory_space<vmem>>, %arg5: memref<1x128xf32, #tpu.memory_space<vmem>>, %arg6: memref<128x128xf32, #tpu.memory_space<vmem>>, %arg7: memref<1x128xf32, #tpu.memory_space<vmem>>, %arg8: memref<2x128xf32, #tpu.memory_space<vmem>>) attributes {dimension_semantics = [#tpu.dimension_semantics<parallel>], iteration_bounds = array<i64: 1>, scalar_prefetch = 0 : i64, scratch_operands = 0 : i64, tpu.core_type = #tpu.core_type<tc>, window_params = [{transform_indices = @transform_0, window_bounds = array<i64: 4, 2, 64, 40>}, {pipeline_mode = #tpu.pipeline_mode<synchronous>, transform_indices = @transform_1, window_bounds = array<i64: 40, 32>}, {pipeline_mode = #tpu.pipeline_mode<synchronous>, transform_indices = @transform_2, window_bounds = array<i64: 288, 128>}, {pipeline_mode = #tpu.pipeline_mode<synchronous>, transform_indices = @transform_3, window_bounds = array<i64: 512, 128>}, {pipeline_mode = #tpu.pipeline_mode<synchronous>, transform_indices = @transform_4, window_bounds = array<i64: 1, 128>}, {pipeline_mode = #tpu.pipeline_mode<synchronous>, transform_indices = @transform_5, window_bounds = array<i64: 128, 128>}, {pipeline_mode = #tpu.pipeline_mode<synchronous>, transform_indices = @transform_6, window_bounds = array<i64: 1, 128>}, {transform_indices = @transform_7, window_bounds = array<i64: 2, 128>}]} {
    %c0 = arith.constant 0 : index
    %c0_0 = arith.constant 0 : index
    %c0_1 = arith.constant 0 : index
    %c0_2 = arith.constant 0 : index
    %0 = vector.load %arg1[%c0, %c0_0, %c0_1, %c0_2] : memref<4x2x64x40xf32, #tpu.memory_space<vmem>>, vector<4x2x64x40xf32>
    %1 = vector.shape_cast %0 : vector<4x2x64x40xf32> to vector<512x40xf32>
    %c0_3 = arith.constant 0 : index
    %c0_4 = arith.constant 0 : index
    %2 = vector.load %arg2[%c0_3, %c0_4] : memref<40x32xf32, #tpu.memory_space<vmem>>, vector<40x32xf32>
    %cst = arith.constant dense<0.000000e+00> : vector<512x32xf32>
    %3 = tpu.matmul %1, %2, %cst {dimension_numbers = #tpu.dot_dimension_numbers<[1], [0], [0], [1], [0, 0, 1, 1], [], []>} : vector<512x40xf32>, vector<40x32xf32>, vector<512x32xf32> -> vector<512x32xf32>
    %cst_5 = arith.constant 0.000000e+00 : f32
    %4 = vector.broadcast %cst_5 : f32 to vector<512x32xf32>
    %5 = arith.maximumf %3, %4 : vector<512x32xf32>
    %6 = vector.shape_cast %5 : vector<512x32xf32> to vector<4x128x32xf32>
    %7 = vector.extract_strided_slice %6 {offsets = [0, 0, 0], sizes = [1, 128, 32], strides = [1, 1, 1]} : vector<4x128x32xf32> to vector<1x128x32xf32>
    %8 = vector.shape_cast %7 : vector<1x128x32xf32> to vector<128x32xf32>
    %9 = vector.extract_strided_slice %6 {offsets = [1, 0, 0], sizes = [1, 128, 32], strides = [1, 1, 1]} : vector<4x128x32xf32> to vector<1x128x32xf32>
    %10 = vector.shape_cast %9 : vector<1x128x32xf32> to vector<128x32xf32>
    %11 = arith.maximumf %8, %10 : vector<128x32xf32>
    %12 = vector.extract_strided_slice %6 {offsets = [2, 0, 0], sizes = [1, 128, 32], strides = [1, 1, 1]} : vector<4x128x32xf32> to vector<1x128x32xf32>
    %13 = vector.shape_cast %12 : vector<1x128x32xf32> to vector<128x32xf32>
    %14 = vector.extract_strided_slice %6 {offsets = [3, 0, 0], sizes = [1, 128, 32], strides = [1, 1, 1]} : vector<4x128x32xf32> to vector<1x128x32xf32>
    %15 = vector.shape_cast %14 : vector<1x128x32xf32> to vector<128x32xf32>
    %16 = arith.maximumf %13, %15 : vector<128x32xf32>
    %17 = arith.maximumf %11, %16 : vector<128x32xf32>
    %18 = vector.shape_cast %17 : vector<128x32xf32> to vector<2x8x8x32xf32>
    %cst_6 = arith.constant 0.000000e+00 : f32
    %19 = vector.broadcast %cst_6 : f32 to vector<2x1x8x32xf32>
    %20 = tpu.concatenate %19, %18, %19 in 1 : vector<2x1x8x32xf32>, vector<2x8x8x32xf32>, vector<2x1x8x32xf32> -> vector<2x10x8x32xf32>
    %cst_7 = arith.constant 0.000000e+00 : f32
    %21 = vector.broadcast %cst_7 : f32 to vector<2x10x1x32xf32>
    %22 = tpu.concatenate %21, %20, %21 in 2 : vector<2x10x1x32xf32>, vector<2x10x8x32xf32>, vector<2x10x1x32xf32> -> vector<2x10x10x32xf32>
    %23 = vector.extract_strided_slice %22 {offsets = [0, 0, 0, 0], sizes = [2, 8, 8, 32], strides = [1, 1, 1, 1]} : vector<2x10x10x32xf32> to vector<2x8x8x32xf32>
    %24 = vector.shape_cast %23 : vector<2x8x8x32xf32> to vector<128x32xf32>
    %25 = vector.extract_strided_slice %22 {offsets = [0, 0, 1, 0], sizes = [2, 8, 8, 32], strides = [1, 1, 1, 1]} : vector<2x10x10x32xf32> to vector<2x8x8x32xf32>
    %26 = vector.shape_cast %25 : vector<2x8x8x32xf32> to vector<128x32xf32>
    %27 = vector.extract_strided_slice %22 {offsets = [0, 0, 2, 0], sizes = [2, 8, 8, 32], strides = [1, 1, 1, 1]} : vector<2x10x10x32xf32> to vector<2x8x8x32xf32>
    %28 = vector.shape_cast %27 : vector<2x8x8x32xf32> to vector<128x32xf32>
    %29 = vector.extract_strided_slice %22 {offsets = [0, 1, 0, 0], sizes = [2, 8, 8, 32], strides = [1, 1, 1, 1]} : vector<2x10x10x32xf32> to vector<2x8x8x32xf32>
    %30 = vector.shape_cast %29 : vector<2x8x8x32xf32> to vector<128x32xf32>
    %31 = vector.extract_strided_slice %22 {offsets = [0, 1, 1, 0], sizes = [2, 8, 8, 32], strides = [1, 1, 1, 1]} : vector<2x10x10x32xf32> to vector<2x8x8x32xf32>
    %32 = vector.shape_cast %31 : vector<2x8x8x32xf32> to vector<128x32xf32>
    %33 = vector.extract_strided_slice %22 {offsets = [0, 1, 2, 0], sizes = [2, 8, 8, 32], strides = [1, 1, 1, 1]} : vector<2x10x10x32xf32> to vector<2x8x8x32xf32>
    %34 = vector.shape_cast %33 : vector<2x8x8x32xf32> to vector<128x32xf32>
    %35 = vector.extract_strided_slice %22 {offsets = [0, 2, 0, 0], sizes = [2, 8, 8, 32], strides = [1, 1, 1, 1]} : vector<2x10x10x32xf32> to vector<2x8x8x32xf32>
    %36 = vector.shape_cast %35 : vector<2x8x8x32xf32> to vector<128x32xf32>
    %37 = vector.extract_strided_slice %22 {offsets = [0, 2, 1, 0], sizes = [2, 8, 8, 32], strides = [1, 1, 1, 1]} : vector<2x10x10x32xf32> to vector<2x8x8x32xf32>
    %38 = vector.shape_cast %37 : vector<2x8x8x32xf32> to vector<128x32xf32>
    %39 = vector.extract_strided_slice %22 {offsets = [0, 2, 2, 0], sizes = [2, 8, 8, 32], strides = [1, 1, 1, 1]} : vector<2x10x10x32xf32> to vector<2x8x8x32xf32>
    %40 = vector.shape_cast %39 : vector<2x8x8x32xf32> to vector<128x32xf32>
    %41 = tpu.concatenate %24, %26, %28, %30, %32, %34, %36, %38, %40 in 1 : vector<128x32xf32>, vector<128x32xf32>, vector<128x32xf32>, vector<128x32xf32>, vector<128x32xf32>, vector<128x32xf32>, vector<128x32xf32>, vector<128x32xf32>, vector<128x32xf32> -> vector<128x288xf32>
    %c0_8 = arith.constant 0 : index
    %c0_9 = arith.constant 0 : index
    %42 = vector.load %arg3[%c0_8, %c0_9] : memref<288x128xf32, #tpu.memory_space<vmem>>, vector<288x128xf32>
    %cst_10 = arith.constant dense<0.000000e+00> : vector<128x128xf32>
    %43 = tpu.matmul %41, %42, %cst_10 {dimension_numbers = #tpu.dot_dimension_numbers<[1], [0], [0], [1], [0, 0, 1, 1], [], []>} : vector<128x288xf32>, vector<288x128xf32>, vector<128x128xf32> -> vector<128x128xf32>
    %cst_11 = arith.constant 0.000000e+00 : f32
    %44 = vector.broadcast %cst_11 : f32 to vector<128x128xf32>
    %45 = arith.maximumf %43, %44 : vector<128x128xf32>
    %46 = vector.shape_cast %45 : vector<128x128xf32> to vector<2x8x8x128xf32>
    %47 = vector.extract_strided_slice %46 {offsets = [0, 0, 0, 0], sizes = [2, 4, 4, 128], strides = [1, 1, 1, 1]} : vector<2x8x8x128xf32> to vector<2x4x4x128xf32>
    %cst_12 = arith.constant dense<0xFF800000> : vector<2x4x128xf32>
    %48 = vector.multi_reduction <maximumf>, %47, %cst_12 [1] : vector<2x4x4x128xf32> to vector<2x4x128xf32>
    %cst_13 = arith.constant dense<0xFF800000> : vector<2x128xf32>
    %49 = vector.multi_reduction <maximumf>, %48, %cst_13 [1] : vector<2x4x128xf32> to vector<2x128xf32>
    %50 = vector.extract_strided_slice %46 {offsets = [0, 0, 4, 0], sizes = [2, 4, 4, 128], strides = [1, 1, 1, 1]} : vector<2x8x8x128xf32> to vector<2x4x4x128xf32>
    %cst_14 = arith.constant dense<0xFF800000> : vector<2x4x128xf32>
    %51 = vector.multi_reduction <maximumf>, %50, %cst_14 [1] : vector<2x4x4x128xf32> to vector<2x4x128xf32>
    %cst_15 = arith.constant dense<0xFF800000> : vector<2x128xf32>
    %52 = vector.multi_reduction <maximumf>, %51, %cst_15 [1] : vector<2x4x128xf32> to vector<2x128xf32>
    %53 = vector.extract_strided_slice %46 {offsets = [0, 4, 0, 0], sizes = [2, 4, 4, 128], strides = [1, 1, 1, 1]} : vector<2x8x8x128xf32> to vector<2x4x4x128xf32>
    %cst_16 = arith.constant dense<0xFF800000> : vector<2x4x128xf32>
    %54 = vector.multi_reduction <maximumf>, %53, %cst_16 [1] : vector<2x4x4x128xf32> to vector<2x4x128xf32>
    %cst_17 = arith.constant dense<0xFF800000> : vector<2x128xf32>
    %55 = vector.multi_reduction <maximumf>, %54, %cst_17 [1] : vector<2x4x128xf32> to vector<2x128xf32>
    %56 = vector.extract_strided_slice %46 {offsets = [0, 4, 4, 0], sizes = [2, 4, 4, 128], strides = [1, 1, 1, 1]} : vector<2x8x8x128xf32> to vector<2x4x4x128xf32>
    %cst_18 = arith.constant dense<0xFF800000> : vector<2x4x128xf32>
    %57 = vector.multi_reduction <maximumf>, %56, %cst_18 [1] : vector<2x4x4x128xf32> to vector<2x4x128xf32>
    %cst_19 = arith.constant dense<0xFF800000> : vector<2x128xf32>
    %58 = vector.multi_reduction <maximumf>, %57, %cst_19 [1] : vector<2x4x128xf32> to vector<2x128xf32>
    %59 = tpu.concatenate %49, %52, %55, %58 in 1 : vector<2x128xf32>, vector<2x128xf32>, vector<2x128xf32>, vector<2x128xf32> -> vector<2x512xf32>
    %c0_20 = arith.constant 0 : index
    %c0_21 = arith.constant 0 : index
    %60 = vector.load %arg4[%c0_20, %c0_21] : memref<512x128xf32, #tpu.memory_space<vmem>>, vector<512x128xf32>
    %cst_22 = arith.constant dense<0.000000e+00> : vector<2x128xf32>
    %61 = tpu.matmul %59, %60, %cst_22 {dimension_numbers = #tpu.dot_dimension_numbers<[1], [0], [0], [1], [0, 0, 1, 1], [], []>} : vector<2x512xf32>, vector<512x128xf32>, vector<2x128xf32> -> vector<2x128xf32>
    %c0_23 = arith.constant 0 : index
    %c0_24 = arith.constant 0 : index
    %62 = vector.load %arg5[%c0_23, %c0_24] : memref<1x128xf32, #tpu.memory_space<vmem>>, vector<1x128xf32>
    %63 = vector.broadcast %62 : vector<1x128xf32> to vector<2x128xf32>
    %64 = arith.addf %61, %63 : vector<2x128xf32>
    %cst_25 = arith.constant 0.000000e+00 : f32
    %65 = vector.broadcast %cst_25 : f32 to vector<2x128xf32>
    %66 = arith.maximumf %64, %65 : vector<2x128xf32>
    %c0_26 = arith.constant 0 : index
    %c0_27 = arith.constant 0 : index
    %67 = vector.load %arg6[%c0_26, %c0_27] : memref<128x128xf32, #tpu.memory_space<vmem>>, vector<128x128xf32>
    %cst_28 = arith.constant dense<0.000000e+00> : vector<2x128xf32>
    %68 = tpu.matmul %66, %67, %cst_28 {dimension_numbers = #tpu.dot_dimension_numbers<[1], [0], [0], [1], [0, 0, 1, 1], [], []>} : vector<2x128xf32>, vector<128x128xf32>, vector<2x128xf32> -> vector<2x128xf32>
    %c0_29 = arith.constant 0 : index
    %c0_30 = arith.constant 0 : index
    %69 = vector.load %arg7[%c0_29, %c0_30] : memref<1x128xf32, #tpu.memory_space<vmem>>, vector<1x128xf32>
    %70 = vector.broadcast %69 : vector<1x128xf32> to vector<2x128xf32>
    %71 = arith.addf %68, %70 : vector<2x128xf32>
    %72 = tpu.iota {dimensions = array<i32: 1>} : vector<2x128xi32>
    %c0_i32 = arith.constant 0 : i32
    %73 = vector.broadcast %c0_i32 : i32 to vector<2x128xi32>
    %74 = arith.cmpi eq, %72, %73 : vector<2x128xi32>
    %c1_i32 = arith.constant 1 : i32
    %75 = vector.broadcast %c1_i32 : i32 to vector<2x128xi32>
    %76 = arith.cmpi eq, %72, %75 : vector<2x128xi32>
    %cst_31 = arith.constant 1.800000e+02 : f32
    %cst_32 = arith.constant 0.000000e+00 : f32
    %77 = vector.broadcast %cst_31 : f32 to vector<2x128xf32>
    %78 = vector.broadcast %cst_32 : f32 to vector<2x128xf32>
    %79 = arith.select %76, %77, %78 : vector<2x128xi1>, vector<2x128xf32>
    %cst_33 = arith.constant 9.000000e+01 : f32
    %80 = vector.broadcast %cst_33 : f32 to vector<2x128xf32>
    %81 = arith.select %74, %80, %79 : vector<2x128xi1>, vector<2x128xf32>
    %82 = math.tanh %71 : vector<2x128xf32>
    %83 = arith.mulf %82, %81 : vector<2x128xf32>
    %c0_34 = arith.constant 0 : index
    %c0_35 = arith.constant 0 : index
    %84 = vector.load %arg8[%c0_34, %c0_35] : memref<2x128xf32, #tpu.memory_space<vmem>>, vector<2x128xf32>
    tpu.vector_store %arg8[%c0_34, %c0_35], %83 {strides = array<i32>} : memref<2x128xf32, #tpu.memory_space<vmem>>, vector<2x128xf32>,
    return
  }
  func.func @transform_0(%arg0: i32) -> (i32, i32, i32, i32) {
    %c0_i32 = arith.constant 0 : i32
    %c0_i32_0 = arith.constant 0 : i32
    %c0_i32_1 = arith.constant 0 : i32
    %c0_i32_2 = arith.constant 0 : i32
    return %c0_i32, %arg0, %c0_i32_0, %c0_i32_1 : i32, i32, i32, i32
  }
  func.func @transform_1(%arg0: i32) -> (i32, i32) {
    %c0_i32 = arith.constant 0 : i32
    %c0_i32_0 = arith.constant 0 : i32
    %c0_i32_1 = arith.constant 0 : i32
    return %c0_i32, %c0_i32_0 : i32, i32
  }
  func.func @transform_2(%arg0: i32) -> (i32, i32) {
    %c0_i32 = arith.constant 0 : i32
    %c0_i32_0 = arith.constant 0 : i32
    %c0_i32_1 = arith.constant 0 : i32
    return %c0_i32, %c0_i32_0 : i32, i32
  }
  func.func @transform_3(%arg0: i32) -> (i32, i32) {
    %c0_i32 = arith.constant 0 : i32
    %c0_i32_0 = arith.constant 0 : i32
    %c0_i32_1 = arith.constant 0 : i32
    return %c0_i32, %c0_i32_0 : i32, i32
  }
  func.func @transform_4(%arg0: i32) -> (i32, i32) {
    %c0_i32 = arith.constant 0 : i32
    %c0_i32_0 = arith.constant 0 : i32
    %c0_i32_1 = arith.constant 0 : i32
    return %c0_i32, %c0_i32_0 : i32, i32
  }
  func.func @transform_5(%arg0: i32) -> (i32, i32) {
    %c0_i32 = arith.constant 0 : i32
    %c0_i32_0 = arith.constant 0 : i32
    %c0_i32_1 = arith.constant 0 : i32
    return %c0_i32, %c0_i32_0 : i32, i32
  }
  func.func @transform_6(%arg0: i32) -> (i32, i32) {
    %c0_i32 = arith.constant 0 : i32
    %c0_i32_0 = arith.constant 0 : i32
    %c0_i32_1 = arith.constant 0 : i32
    return %c0_i32, %c0_i32_0 : i32, i32
  }
  func.func @transform_7(%arg0: i32) -> (i32, i32) {
    %c0_i32 = arith.constant 0 : i32
    %c0_i32_0 = arith.constant 0 : i32
    return %arg0, %c0_i32 : i32, i32
  }
}

</mosaic_0001>

<bundles_post_ra>
// kernel: geoguesser_logits.1
= control target key start
LH: loop header
LB: loop body
LE: loop exit
PB: predicated region body
PF: predicated region fallthrough
CT: control target
= control target key end

     0   :  { %vm96_vm0 = vcmask 326656   ;;  %s4455_s0 = inlined_call_operand.vmem [shape: f32[4,2,64,40], index: 0, kind: input, shape index: {}]   ;;  %s4456_s1 = inlined_call_operand.vmem [shape: f32[40,32], index: 1, kind: input, shape index: {}]   ;;  %s4457_s2 = inlined_call_operand.vmem [shape: f32[288,128], index: 2, kind: input, shape index: {}]   ;;  %s4458_s3 = inlined_call_operand.vmem [shape: f32[512,128], index: 3, kind: input, shape index: {}]   ;;  %s4459_s4 = inlined_call_operand.vmem [shape: f32[1,128], index: 4, kind: input, shape index: {}]   ;;  %s4460_s5 = inlined_call_operand.vmem [shape: f32[128,128], index: 5, kind: input, shape index: {}]   ;;  %s4461_s6 = inlined_call_operand.vmem [shape: f32[1,128], index: 6, kind: input, shape index: {}]   ;;  %s4462_s7 = inlined_call_operand.hbm [shape: f32[2,128], index: 7, kind: output, shape index: {}]  }
   0x1   :  { %v95_v0 = vld [vmem:[%s4456_s1 + $0x20] sm:$0xff]  ;;  %v94_v1 = vld [vmem:[%s4456_s1 + $0x18] sm:$0xff]  ;;  %v93_v3 = vld [vmem:[%s4456_s1 + $0x10] sm:$0xff] }
   0x2   :  { %2568 = vmatprep.subr.mxu0 %v95_v0  ;;  %v27_v2 = vld [vmem:[%s4455_s0] sm:$0xff]  ;;  %v92_v4 = vld [vmem:[%s4456_s1 + $0x8] sm:$0xff]  ;;  %v29_v7 = vld [vmem:[%s4455_s0 + $0x10] sm:$0xff] }
   0x3   :  { %2569 = vmatpush3.msra.mxu0 %v95_v0  ;;  %2578 = vmatprep.mubr.msk.f32.mxu0 %vm96_vm0, %v27_v2  ;;  %v91_v5 = vld [vmem:[%s4456_s1] sm:$0xff]  ;;  %v28_v6 = vld [vmem:[%s4455_s0 + $0x8] sm:$0xff]  ;;  %v30_v8 = vld [vmem:[%s4455_s0 + $0x18] sm:$0xff] }
   0x4   :  { %2570 = vmatprep.subr.mxu0 %v94_v1  ;;  %v31_v9 = vld [vmem:[%s4455_s0 + $0x20] sm:$0xff]  ;;  %v32_v10 = vld [vmem:[%s4455_s0 + $0x28] sm:$0xff]  ;;  %v33_v11 = vld [vmem:[%s4455_s0 + $0x30] sm:$0xff] }
   0x5   :  { %2571 = vmatpush3.msra.mxu0 %v94_v1  ;;  %v34_v12 = vld [vmem:[%s4455_s0 + $0x38] sm:$0xff]  ;;  %v35_v13 = vld [vmem:[%s4455_s0 + $0x40] sm:$0xff] }
   0x6   :  { %2572 = vmatprep.subr.mxu0 %v93_v3 }
   0x7   :  { %2573 = vmatpush3.msra.mxu0 %v93_v3 }
   0x8   :  { %2574 = vmatprep.subr.mxu0 %v92_v4 }
   0x9   :  { %2575 = vmatpush3.msra.mxu0 %v92_v4 }
   0xa   :  { %2576 = vmatprep.subr.mxu0 %v91_v5 }
   0xb   :  { %2577 = vmatpush3.msra.mxu0 %v91_v5 }
   0xc   :  { %2579 = vmatmul.mubr.msk.f32.vlgmr.msra.gmra.mxu0 %vm96_vm0, %v28_v6 }
   0xd   :  { %2581 = vmatprep.mubr.msk.f32.mxu0 %vm96_vm0, %v29_v7 }
  0x10   :  { %2582 = vmatmul.mubr.msk.f32.gmra.mxu0 %vm96_vm0, %v30_v8 }
  0x11   :  { %2584 = vmatprep.mubr.msk.f32.mxu0 %vm96_vm0, %v31_v9 }
  0x14   :  { %2585 = vmatmul.mubr.msk.f32.gmra.mxu0 %vm96_vm0, %v32_v10 }
  0x15   :  { %2587 = vmatprep.mubr.msk.f32.mxu0 %vm96_vm0, %v33_v11 }
  0x18   :  { %2588 = vmatmul.mubr.msk.f32.gmra.mxu0 %vm96_vm0, %v34_v12 }
  0x19   :  { %12 = vsyncpa [#allocation3], 0  ;;  %2590 = vmatprep.mubr.msk.f32.mxu0 %vm96_vm0, %v35_v13  ;;  %v36_v14 = vld [vmem:[%s4455_s0 + $0x48] sm:$0xff]  ;;  %v37_v15 = vld [vmem:[%s4455_s0 + $0x50] sm:$0xff]  ;;  %vm837_vm1 = vcmask 1040384   ;;  %vm948_vm2 = vcmask 1045504  }
  0x1a   :  { %v38_v16 = vld [vmem:[%s4455_s0 + $0x58] sm:$0xff]  ;;  %v39_v17 = vld [vmem:[%s4455_s0 + $0x60] sm:$0xff]  ;;  %v40_v18 = vld [vmem:[%s4455_s0 + $0x68] sm:$0xff]  ;;  %s2992_s17 = smov 64   ;;  %vm902_vm3 = vcmask 1046528   ;;  %s2993_s9 = smov 96  }
  0x1b   :  { %v41_v19 = vld [vmem:[%s4455_s0 + $0x70] sm:$0xff]  ;;  %v42_v20 = vld [vmem:[%s4455_s0 + $0x78] sm:$0xff]  ;;  %v43_v21 = vld [vmem:[%s4455_s0 + $0x80] sm:$0xff]  ;;  %s2994_s10 = smov 32   ;;  %vm1302_vm4 = vcmask 261120   ;;  %vm1318_vm5 = vcmask 523264  }
  0x1c   :  { %2591 = vmatmul.mubr.msk.f32.gmra.mxu0 %vm96_vm0, %v36_v14  ;;  %v44_v22 = vld [vmem:[%s4455_s0 + $0x88] sm:$0xff]  ;;  %v45_v23 = vld [vmem:[%s4455_s0 + $0x90] sm:$0xff]  ;;  %v46_v24 = vld [vmem:[%s4455_s0 + $0x98] sm:$0xff]  ;;  %vm1334_vm6 = vcmask 785408   ;;  %vm1771_vm7 = vcmask 1043456   ;;  %vm1800_vm8 = vcmask 1047556  }
  0x1d   :  { %2593 = vmatprep.mubr.msk.f32.mxu0 %vm96_vm0, %v37_v15  ;;  %v47_v25 = vld [vmem:[%s4455_s0 + $0xa0] sm:$0xff]  ;;  %v48_v26 = vld [vmem:[%s4455_s0 + $0xa8] sm:$0xff]  ;;  %v49_v27 = vld [vmem:[%s4455_s0 + $0xb0] sm:$0xff]  ;;  %vm1887_vm9 = vcmask 1041409   ;;  %vm2995_vm10 = vmmov 0  }
  0x1e   :  { %v50_v28 = vld [vmem:[%s4455_s0 + $0xb8] sm:$0xff]  ;;  %v51_v29 = vld [vmem:[%s4455_s0 + $0xc0] sm:$0xff]  ;;  %v52_v30 = vld [vmem:[%s4455_s0 + $0xc8] sm:$0xff] }
  0x1f   :  { %v53_v31 = vld [vmem:[%s4455_s0 + $0xd0] sm:$0xff]  ;;  %v54_v32 = vld [vmem:[%s4455_s0 + $0xd8] sm:$0xff]  ;;  %v55_v33 = vld [vmem:[%s4455_s0 + $0xe0] sm:$0xff] }
  0x20   :  { %2594 = vmatmul.mubr.msk.f32.gmra.mxu0 %vm96_vm0, %v38_v16  ;;  %v56_v34 = vld [vmem:[%s4455_s0 + $0xe8] sm:$0xff]  ;;  %v57_v35 = vld [vmem:[%s4455_s0 + $0xf0] sm:$0xff]  ;;  %v58_v36 = vld [vmem:[%s4455_s0 + $0xf8] sm:$0xff] }
  0x21   :  { %2596 = vmatprep.mubr.msk.f32.mxu0 %vm96_vm0, %v39_v17  ;;  %v59_v37 = vld [vmem:[%s4455_s0 + $0x100] sm:$0xff]  ;;  %v60_v38 = vld [vmem:[%s4455_s0 + $0x108] sm:$0xff]  ;;  %v61_v39 = vld [vmem:[%s4455_s0 + $0x110] sm:$0xff] }
  0x22   :  { %v62_v40 = vld [vmem:[%s4455_s0 + $0x118] sm:$0xff]  ;;  %v63_v41 = vld [vmem:[%s4455_s0 + $0x120] sm:$0xff]  ;;  %v64_v42 = vld [vmem:[%s4455_s0 + $0x128] sm:$0xff] }
  0x23   :  { %v65_v43 = vld [vmem:[%s4455_s0 + $0x130] sm:$0xff]  ;;  %v66_v44 = vld [vmem:[%s4455_s0 + $0x138] sm:$0xff]  ;;  %v67_v45 = vld [vmem:[%s4455_s0 + $0x140] sm:$0xff] }
  0x24   :  { %2597 = vmatmul.mubr.msk.f32.gmra.mxu0 %vm96_vm0, %v40_v18  ;;  %v68_v46 = vld [vmem:[%s4455_s0 + $0x148] sm:$0xff]  ;;  %v69_v47 = vld [vmem:[%s4455_s0 + $0x150] sm:$0xff]  ;;  %v70_v48 = vld [vmem:[%s4455_s0 + $0x158] sm:$0xff] }
  0x25   :  { %2599 = vmatprep.mubr.msk.f32.mxu0 %vm96_vm0, %v41_v19  ;;  %v71_v49 = vld [vmem:[%s4455_s0 + $0x160] sm:$0xff]  ;;  %v72_v50 = vld [vmem:[%s4455_s0 + $0x168] sm:$0xff]  ;;  %v73_v51 = vld [vmem:[%s4455_s0 + $0x170] sm:$0xff] }
  0x26   :  { %v74_v52 = vld [vmem:[%s4455_s0 + $0x178] sm:$0xff]  ;;  %v75_v53 = vld [vmem:[%s4455_s0 + $0x180] sm:$0xff]  ;;  %v76_v54 = vld [vmem:[%s4455_s0 + $0x188] sm:$0xff] }
  0x27   :  { %v77_v55 = vld [vmem:[%s4455_s0 + $0x190] sm:$0xff]  ;;  %v78_v56 = vld [vmem:[%s4455_s0 + $0x198] sm:$0xff]  ;;  %v79_v57 = vld [vmem:[%s4455_s0 + $0x1a0] sm:$0xff] }
  0x28   :  { %2600 = vmatmul.mubr.msk.f32.gmra.mxu0 %vm96_vm0, %v42_v20  ;;  %v80_v58 = vld [vmem:[%s4455_s0 + $0x1a8] sm:$0xff]  ;;  %v81_v59 = vld [vmem:[%s4455_s0 + $0x1b0] sm:$0xff]  ;;  %v82_v60 = vld [vmem:[%s4455_s0 + $0x1b8] sm:$0xff] }
  0x29   :  { %2602 = vmatprep.mubr.msk.f32.mxu0 %vm96_vm0, %v43_v21  ;;  %v83_v61 = vld [vmem:[%s4455_s0 + $0x1c0] sm:$0xff]  ;;  %v84_v62 = vld [vmem:[%s4455_s0 + $0x1c8] sm:$0xff]  ;;  %v85_v63 = vld [vmem:[%s4455_s0 + $0x1d0] sm:$0xff] }
  0x2a   :  { %v86_v0 = vld [vmem:[%s4455_s0 + $0x1d8] sm:$0xff]  ;;  %v87_v1 = vld [vmem:[%s4455_s0 + $0x1e0] sm:$0xff]  ;;  %v88_v2 = vld [vmem:[%s4455_s0 + $0x1e8] sm:$0xff] }
  0x2b   :  { %v89_v3 = vld [vmem:[%s4455_s0 + $0x1f0] sm:$0xff]  ;;  %v90_v4 = vld [vmem:[%s4455_s0 + $0x1f8] sm:$0xff] }
  0x2c   :  { %2603 = vmatmul.mubr.msk.f32.gmra.mxu0 %vm96_vm0, %v44_v22 }
  0x2d   :  { %2605 = vmatprep.mubr.msk.f32.mxu0 %vm96_vm0, %v45_v23 }
  0x30   :  { %2606 = vmatmul.mubr.msk.f32.gmra.mxu0 %vm96_vm0, %v46_v24 }
  0x31   :  { %2608 = vmatprep.mubr.msk.f32.mxu0 %vm96_vm0, %v47_v25 }
  0x34   :  { %2609 = vmatmul.mubr.msk.f32.gmra.mxu0 %vm96_vm0, %v48_v26 }
  0x35   :  { %2611 = vmatprep.mubr.msk.f32.mxu0 %vm96_vm0, %v49_v27 }
  0x38   :  { %2612 = vmatmul.mubr.msk.f32.gmra.mxu0 %vm96_vm0, %v50_v28 }
  0x39   :  { %2614 = vmatprep.mubr.msk.f32.mxu0 %vm96_vm0, %v51_v29 }
  0x3c   :  { %2615 = vmatmul.mubr.msk.f32.gmra.mxu0 %vm96_vm0, %v52_v30 }
  0x3d   :  { %2617 = vmatprep.mubr.msk.f32.mxu0 %vm96_vm0, %v53_v31 }
  0x40   :  { %2618 = vmatmul.mubr.msk.f32.gmra.mxu0 %vm96_vm0, %v54_v32 }
  0x41   :  { %2620 = vmatprep.mubr.msk.f32.mxu0 %vm96_vm0, %v55_v33 }
  0x44   :  { %2621 = vmatmul.mubr.msk.f32.gmra.mxu0 %vm96_vm0, %v56_v34 }
  0x45   :  { %2623 = vmatprep.mubr.msk.f32.mxu0 %vm96_vm0, %v57_v35 }
  0x48   :  { %2624 = vmatmul.mubr.msk.f32.gmra.mxu0 %vm96_vm0, %v58_v36 }
  0x49   :  { %2626 = vmatprep.mubr.msk.f32.mxu0 %vm96_vm0, %v59_v37 }
  0x4c   :  { %2627 = vmatmul.mubr.msk.f32.gmra.mxu0 %vm96_vm0, %v60_v38 }
  0x4d   :  { %2629 = vmatprep.mubr.msk.f32.mxu0 %vm96_vm0, %v61_v39 }
  0x50   :  { %2630 = vmatmul.mubr.msk.f32.gmra.mxu0 %vm96_vm0, %v62_v40 }
  0x51   :  { %2632 = vmatprep.mubr.msk.f32.mxu0 %vm96_vm0, %v63_v41 }
  0x54   :  { %2633 = vmatmul.mubr.msk.f32.gmra.mxu0 %vm96_vm0, %v64_v42 }
  0x55   :  { %2635 = vmatprep.mubr.msk.f32.mxu0 %vm96_vm0, %v65_v43 }
  0x58   :  { %2636 = vmatmul.mubr.msk.f32.gmra.mxu0 %vm96_vm0, %v66_v44 }
  0x59   :  { %2638 = vmatprep.mubr.msk.f32.mxu0 %vm96_vm0, %v67_v45 }
  0x5c   :  { %2639 = vmatmul.mubr.msk.f32.gmra.mxu0 %vm96_vm0, %v68_v46 }
  0x5d   :  { %2641 = vmatprep.mubr.msk.f32.mxu0 %vm96_vm0, %v69_v47 }
  0x60   :  { %2642 = vmatmul.mubr.msk.f32.gmra.mxu0 %vm96_vm0, %v70_v48 }
  0x61   :  { %2644 = vmatprep.mubr.msk.f32.mxu0 %vm96_vm0, %v71_v49 }
  0x64   :  { %2645 = vmatmul.mubr.msk.f32.gmra.mxu0 %vm96_vm0, %v72_v50 }
  0x65   :  { %2647 = vmatprep.mubr.msk.f32.mxu0 %vm96_vm0, %v73_v51 }
  0x68   :  { %2648 = vmatmul.mubr.msk.f32.gmra.mxu0 %vm96_vm0, %v74_v52 }
  0x69   :  { %2650 = vmatprep.mubr.msk.f32.mxu0 %vm96_vm0, %v75_v53 }
  0x6c   :  { %2651 = vmatmul.mubr.msk.f32.gmra.mxu0 %vm96_vm0, %v76_v54 }
  0x6d   :  { %2653 = vmatprep.mubr.msk.f32.mxu0 %vm96_vm0, %v77_v55 }
  0x70   :  { %2654 = vmatmul.mubr.msk.f32.gmra.mxu0 %vm96_vm0, %v78_v56 }
  0x71   :  { %2656 = vmatprep.mubr.msk.f32.mxu0 %vm96_vm0, %v79_v57 }
  0x74   :  { %2657 = vmatmul.mubr.msk.f32.gmra.mxu0 %vm96_vm0, %v80_v58 }
  0x75   :  { %2659 = vmatprep.mubr.msk.f32.mxu0 %vm96_vm0, %v81_v59 }
  0x78   :  { %2660 = vmatmul.mubr.msk.f32.gmra.mxu0 %vm96_vm0, %v82_v60 }
  0x79   :  { %2662 = vmatprep.mubr.msk.f32.mxu0 %vm96_vm0, %v83_v61 }
  0x7c   :  { %2663 = vmatmul.mubr.msk.f32.gmra.mxu0 %vm96_vm0, %v84_v62 }
  0x7d   :  { %2665 = vmatprep.mubr.msk.f32.mxu0 %vm96_vm0, %v85_v63 }
  0x80   :  { %2666 = vmatmul.mubr.msk.f32.gmra.mxu0 %vm96_vm0, %v86_v0 }
  0x81   :  { %2668 = vmatprep.mubr.msk.f32.mxu0 %vm96_vm0, %v87_v1 }
  0x84   :  { %2669 = vmatmul.mubr.msk.f32.gmra.mxu0 %vm96_vm0, %v88_v2 }
  0x85   :  { %2671 = vmatprep.mubr.msk.f32.mxu0 %vm96_vm0, %v89_v3 }
  0x88   :  { %2672 = vmatmul.mubr.msk.f32.gmra.mxu0 %vm96_vm0, %v90_v4 }
  0xcc   :  { %v2580_v5 = vpop.f32.mrf.mxu0 }
  0xcd   :  { %v675_v22 = vmax.f32 %v2580_v5, 0.0 }
  0xce   :  { %v355_v6 = vpop.f32.mrf.mxu0 }
  0xcf   :  { %v674_v25 = vmax.f32 %v355_v6, 0.0 }
  0xd0   :  { %v2583_v7 = vpop.f32.mrf.mxu0 }
  0xd1   :  { %v677_v29 = vmax.f32 %v2583_v7, 0.0 }
  0xd2   :  { %v365_v8 = vpop.f32.mrf.mxu0 }
  0xd3   :  { %v676_v33 = vmax.f32 %v365_v8, 0.0 }
  0xd4   :  { %v2586_v9 = vpop.f32.mrf.mxu0 }
  0xd5   :  { %v679_v37 = vmax.f32 %v2586_v9, 0.0 }
  0xd6   :  { %v375_v10 = vpop.f32.mrf.mxu0 }
  0xd7   :  { %v678_v41 = vmax.f32 %v375_v10, 0.0 }
  0xd8   :  { %v2589_v11 = vpop.f32.mrf.mxu0 }
  0xd9   :  { %v681_v45 = vmax.f32 %v2589_v11, 0.0 }
  0xda   :  { %v385_v12 = vpop.f32.mrf.mxu0 }
  0xdb   :  { %v680_v49 = vmax.f32 %v385_v12, 0.0 }
  0xdc   :  { %v2592_v13 = vpop.f32.mrf.mxu0 }
  0xdd   :  { %v683_v53 = vmax.f32 %v2592_v13, 0.0 }
  0xde   :  { %v395_v14 = vpop.f32.mrf.mxu0 }
  0xdf   :  { %v682_v57 = vmax.f32 %v395_v14, 0.0 }
  0xe0   :  { %v2595_v15 = vpop.f32.mrf.mxu0 }
  0xe1   :  { %v685_v61 = vmax.f32 %v2595_v15, 0.0 }
  0xe2   :  { %v405_v16 = vpop.f32.mrf.mxu0 }
  0xe3   :  { %v684_v1 = vmax.f32 %v405_v16, 0.0 }
  0xe4   :  { %v2598_v17 = vpop.f32.mrf.mxu0 }
  0xe5   :  { %v687_v5 = vmax.f32 %v2598_v17, 0.0 }
  0xe6   :  { %v415_v18 = vpop.f32.mrf.mxu0 }
  0xe7   :  { %v686_v9 = vmax.f32 %v415_v18, 0.0 }
  0xe8   :  { %v3308_v19 = vpop.f32.mrf.mxu0 }
  0xe9   :  { %v689_v13 = vmax.f32 %v3308_v19, 0.0 }
  0xea   :  { %v3310_v20 = vpop.f32.mrf.mxu0 }
  0xec   :  { %v2604_v21 = vpop.f32.mrf.mxu0 }
  0xed   :  { %v691_v23 = vmax.f32 %v2604_v21, 0.0  ;;  %v688_v21 = vmax.f32 %v3310_v20, 0.0 }
  0xee   :  { %v435_v24 = vpop.f32.mrf.mxu0 }
  0xef   :  { %v3312_v26 = vmax.f32 %v675_v22, %v691_v23  ;;  %v690_v27 = vmax.f32 %v435_v24, 0.0 }
  0xf0   :  { %v2607_v28 = vpop.f32.mrf.mxu0 }
  0xf1   :  { %v3314_v30 = vmax.f32 %v674_v25, %v690_v27  ;;  %v693_v31 = vmax.f32 %v2607_v28, 0.0 }
  0xf2   :  { %v445_v32 = vpop.f32.mrf.mxu0 }
  0xf3   :  { %v3316_v34 = vmax.f32 %v677_v29, %v693_v31  ;;  %v692_v35 = vmax.f32 %v445_v32, 0.0 }
  0xf4   :  { %v2610_v36 = vpop.f32.mrf.mxu0 }
  0xf5   :  { %v3318_v38 = vmax.f32 %v676_v33, %v692_v35  ;;  %v695_v39 = vmax.f32 %v2610_v36, 0.0  ;;  %v1430_v36 = vld [vmem:[%s4457_s2 + $0xf8] sm:$0xff] }
  0xf6   :  { %v455_v40 = vpop.f32.mrf.mxu0  ;;  %2381 = vmatprep.subr.mxu1 %v1430_v36  ;;  %v1406_v36 = vld [vmem:[%s4457_s2 + $0x38] sm:$0xff] }
  0xf7   :  { %v3320_v42 = vmax.f32 %v679_v37, %v695_v39  ;;  %v694_v43 = vmax.f32 %v455_v40, 0.0  ;;  %v1414_v37 = vld [vmem:[%s4457_s2 + $0x78] sm:$0xff]  ;;  %v1429_v40 = vld [vmem:[%s4457_s2 + $0xf0] sm:$0xff] }
  0xf8   :  { %v2613_v44 = vpop.f32.mrf.mxu0  ;;  %2382 = vmatpush3.msra.mxu1 %v1414_v37 }
  0xf9   :  { %v3322_v46 = vmax.f32 %v678_v41, %v694_v43  ;;  %v697_v47 = vmax.f32 %v2613_v44, 0.0  ;;  %v1413_v41 = vld [vmem:[%s4457_s2 + $0x70] sm:$0xff]  ;;  %v1428_v43 = vld [vmem:[%s4457_s2 + $0xe8] sm:$0xff]  ;;  %2383 = vmatprep.subr.mxu1 %v1429_v40 }
  0xfa   :  { %v465_v48 = vpop.f32.mrf.mxu0  ;;  %2384 = vmatpush3.msra.mxu1 %v1413_v41 }
  0xfb   :  { %v3324_v50 = vmax.f32 %v681_v45, %v697_v47  ;;  %v696_v51 = vmax.f32 %v465_v48, 0.0  ;;  %v1412_v45 = vld [vmem:[%s4457_s2 + $0x68] sm:$0xff]  ;;  %v1427_v47 = vld [vmem:[%s4457_s2 + $0xe0] sm:$0xff]  ;;  %2385 = vmatprep.subr.mxu1 %v1428_v43 }
  0xfc   :  { %v2616_v52 = vpop.f32.mrf.mxu0  ;;  %2386 = vmatpush3.msra.mxu1 %v1412_v45 }
  0xfd   :  { %v3326_v54 = vmax.f32 %v680_v49, %v696_v51  ;;  %v699_v55 = vmax.f32 %v2616_v52, 0.0  ;;  %v1411_v49 = vld [vmem:[%s4457_s2 + $0x60] sm:$0xff]  ;;  %v4463_v51 = vmov 0.0   ;;  %2387 = vmatprep.subr.mxu1 %v1427_v47 }
  0xfe   :  { %v475_v56 = vpop.f32.mrf.mxu0  ;;  %v803_v52 = vrot.slane %v4463_v51, 7  ;;  %2388 = vmatpush3.msra.mxu1 %v1411_v49  ;;  %v1405_v49 = vld [vmem:[%s4457_s2 + $0x30] sm:$0xff] }
  0xff   :  { %v3328_v58 = vmax.f32 %v683_v53, %v699_v55  ;;  %v698_v59 = vmax.f32 %v475_v56, 0.0  ;;  %v1426_v53 = vld [vmem:[%s4457_s2 + $0xd8] sm:$0xff] }
 0x100   :  { %v2619_v60 = vpop.f32.mrf.mxu0  ;;  %v1410_v56 = vld [vmem:[%s4457_s2 + $0x58] sm:$0xff]  ;;  %2389 = vmatprep.subr.mxu1 %v1426_v53 }
 0x101   :  { %v3330_v62 = vmax.f32 %v682_v57, %v698_v59  ;;  %v701_v63 = vmax.f32 %v2619_v60, 0.0  ;;  %v1425_v57 = vld [vmem:[%s4457_s2 + $0xd0] sm:$0xff]  ;;  %2390 = vmatpush3.msra.mxu1 %v1410_v56 }
 0x102   :  { %v485_v0 = vpop.f32.mrf.mxu0  ;;  %v1409_v60 = vld [vmem:[%s4457_s2 + $0x50] sm:$0xff]  ;;  %2391 = vmatprep.subr.mxu1 %v1425_v57 }
 0x103   :  { %v3332_v2 = vmax.f32 %v685_v61, %v701_v63  ;;  %v700_v3 = vmax.f32 %v485_v0, 0.0  ;;  %v3412_v0 = vsel %vm837_vm1, 0.0, %v803_v52  ;;  %2392 = vmatpush3.msra.mxu1 %v1409_v60 }
 0x104   :  { %v2622_v4 = vpop.f32.mrf.mxu0 }
 0x105   :  { %v3334_v6 = vmax.f32 %v684_v1, %v700_v3  ;;  %v703_v7 = vmax.f32 %v2622_v4, 0.0  ;;  %v3415_v1 = vsel %vm837_vm1, %v803_v52, 0.0  ;;  %v1424_v3 = vld [vmem:[%s4457_s2 + $0xc8] sm:$0xff] }
 0x106   :  { %v495_v8 = vpop.f32.mrf.mxu0  ;;  %2393 = vmatprep.subr.mxu1 %v1424_v3 }
 0x107   :  { %v3336_v10 = vmax.f32 %v687_v5, %v703_v7  ;;  %v702_v11 = vmax.f32 %v495_v8, 0.0  ;;  %v1408_v5 = vld [vmem:[%s4457_s2 + $0x48] sm:$0xff] }
 0x108   :  { %v2625_v12 = vpop.f32.mrf.mxu0  ;;  %2394 = vmatpush3.msra.mxu1 %v1408_v5  ;;  %v1403_v5 = vld [vmem:[%s4457_s2 + $0x20] sm:$0xff] }
 0x109   :  { %v3339_v14 = vmax.f32 %v686_v9, %v702_v11  ;;  %v705_v15 = vmax.f32 %v2625_v12, 0.0  ;;  %v1423_v11 = vld [vmem:[%s4457_s2 + $0xc0] sm:$0xff] }
 0x10a   :  { %v505_v16 = vpop.f32.mrf.mxu0  ;;  %2395 = vmatprep.subr.mxu1 %v1423_v11 }
 0x10b   :  { %v3342_v22 = vmax.f32 %v689_v13, %v705_v15  ;;  %v704_v17 = vmax.f32 %v505_v16, 0.0  ;;  %v949_v13 = vrot.slane %v3412_v0, 2  ;;  %v950_v15 = vrot.slane %v3415_v1, 2  ;;  %v1407_v16 = vld [vmem:[%s4457_s2 + $0x40] sm:$0xff] }
 0x10c   :  { %v2628_v23 = vpop.f32.mrf.mxu0  ;;  %2396 = vmatpush3.msra.mxu1 %v1407_v16 }
 0x10d   :  { %v3344_v24 = vmax.f32 %v688_v21, %v704_v17  ;;  %v707_v61 = vmax.f32 %v2628_v23, 0.0  ;;  %v1422_v23 = vld [vmem:[%s4457_s2 + $0xb8] sm:$0xff]  ;;  %v3445_v47 = vsel %vm948_vm2, %v949_v13, %v950_v15 }
 0x10e   :  { %v515_v25 = vpop.f32.mrf.mxu0  ;;  %2397 = vmatprep.subr.mxu1 %v1422_v23  ;;  %v1402_v13 = vld [vmem:[%s4457_s2 + $0x18] sm:$0xff] }
 0x10f   :  { %v706_v7 = vmax.f32 %v515_v25, 0.0  ;;  %2398 = vmatpush3.msra.mxu1 %v1406_v36 }
 0x110   :  { %v3346_v18 = vpop.f32.mrf.mxu0 }
 0x111   :  { %v709_v52 = vmax.f32 %v3346_v18, 0.0 }
 0x112   :  { %v3348_v27 = vpop.f32.mrf.mxu0 }
 0x113   :  { %v708_v56 = vmax.f32 %v3348_v27, 0.0 }
 0x114   :  { %v3350_v28 = vpop.f32.mrf.mxu0 }
 0x116   :  { %v3352_v19 = vpop.f32.mrf.mxu0 }
 0x118   :  { %v3354_v29 = vpop.f32.mrf.mxu0 }
 0x11a   :  { %v3356_v31 = vpop.f32.mrf.mxu0 }
 0x11c   :  { %v3358_v20 = vpop.f32.mrf.mxu0 }
 0x11e   :  { %v3360_v32 = vpop.f32.mrf.mxu0 }
 0x120   :  { %v3362_v33 = vpop.f32.mrf.mxu0 }
 0x122   :  { %v3364_v35 = vpop.f32.mrf.mxu0 }
 0x124   :  { %v3372_v39 = vpop.f32.mrf.mxu0 }
 0x126   :  { %v3383_v44 = vpop.f32.mrf.mxu0 }
 0x128   :  { %v3391_v48 = vpop.f32.mrf.mxu0 }
 0x12a   :  { %v3400_v55 = vpop.f32.mrf.mxu0 }
 0x12c   :  { %v2652_v59 = vpop.f32.mrf.mxu0 }
 0x12d   :  { %v723_v63 = vmax.f32 %v2652_v59, 0.0  ;;  %v1404_v59 = vld [vmem:[%s4457_s2 + $0x28] sm:$0xff] }
 0x12e   :  { %v595_v4 = vpop.f32.mrf.mxu0 }
 0x12f   :  { %v755_v8 = vmax.f32 %v707_v61, %v723_v63  ;;  %v722_v9 = vmax.f32 %v595_v4, 0.0  ;;  %v1419_v63 = vld [vmem:[%s4457_s2 + $0xa0] sm:$0xff] }
 0x130   :  { %v2655_v12 = vpop.f32.mrf.mxu0 }
 0x131   :  { %v771_v21 = vmax.f32 %v3312_v26, %v755_v8  ;;  %v754_v17 = vmax.f32 %v706_v7, %v722_v9  ;;  %v725_v40 = vmax.f32 %v2655_v12, 0.0  ;;  %v1421_v26 = vld [vmem:[%s4457_s2 + $0xb0] sm:$0xff]  ;;  %v903_v7 = vrot.slane %v3412_v0, 1  ;;  %v1418_v9 = vld [vmem:[%s4457_s2 + $0x98] sm:$0xff] }
 0x132   :  { %v605_v25 = vpop.f32.mrf.mxu0  ;;  %2399 = vmatprep.subr.mxu1 %v1421_v26  ;;  %v904_v8 = vrot.slane %v3415_v1, 1  ;;  %v1417_v1 = vld [vmem:[%s4457_s2 + $0x90] sm:$0xff] }
 0x133   :  { %v805_v37 = vrot.slane %v771_v21, 7  ;;  %v770_v41 = vmax.f32 %v3314_v30, %v754_v17  ;;  %v724_v43 = vmax.f32 %v605_v25, 0.0  ;;  %v1420_v30 = vld [vmem:[%s4457_s2 + $0xa8] sm:$0xff]  ;;  %v757_v18 = vmax.f32 %v709_v52, %v725_v40  ;;  %2400 = vmatpush3.msra.mxu1 %v1405_v49 }
 0x134   :  { %v3442_v45 = vpop.f32.mrf.mxu0  ;;  %2401 = vmatprep.subr.mxu1 %v1420_v30  ;;  %v712_v21 = vmax.f32 %v3356_v31, 0.0  ;;  %v1416_v31 = vld [vmem:[%s4457_s2 + $0x88] sm:$0xff]  ;;  %v711_v52 = vmax.f32 %v3350_v28, 0.0  ;;  %v710_v30 = vmax.f32 %v3352_v19, 0.0  ;;  %v1399_v28 = vld [vmem:[%s4457_s2] sm:$0xff] }
 0x135   :  { %v3452_v53 = vsel %vm837_vm1, 0.0, %v805_v37  ;;  %v3464_v60 = vsel %vm837_vm1, %v805_v37, 0.0  ;;  %v804_v27 = vrot.slane %v770_v41, 7  ;;  %v756_v3 = vmax.f32 %v708_v56, %v724_v43  ;;  %2402 = vmatpush3.msra.mxu1 %v1404_v59  ;;  %v1400_v49 = vld [vmem:[%s4457_s2 + $0x8] sm:$0xff]  ;;  %v1415_v59 = vld [vmem:[%s4457_s2 + $0x80] sm:$0xff] }
 0x136   :  { %v3458_v57 = vpop.f32.mrf.mxu0  ;;  %v2747_v61 = vpack.i.bf16 %v3445_v47, %v3452_v53  ;;  %v910_v11 = vrot.slane %v3464_v60, 1  ;;  %2403 = vmatprep.subr.mxu1 %v1419_v63  ;;  %v773_v15 = vmax.f32 %v3316_v34, %v757_v18  ;;  %v909_v25 = vrot.slane %v3452_v53, 1  ;;  %v1401_v34 = vld [vmem:[%s4457_s2 + $0x10] sm:$0xff] }
 0x137   :  { %2404 = vmatpush3.msra.mxu1 %v1403_v5  ;;  %v3492_v17 = vsel %vm837_vm1, %v804_v27, 0.0  ;;  %v772_v23 = vmax.f32 %v3318_v38, %v756_v3  ;;  %v3500_v37 = vsel %vm902_vm3, %v903_v7, %v904_v8  ;;  %v727_v40 = vmax.f32 %v3442_v45, 0.0 }
 0x138   :  { %v3471_v4 = vpop.f32.mrf.mxu0  ;;  %2748 = vrot.lane.b32.xlu0 %v2747_v61, %s2992_s17  ;;  %2405 = vmatprep.subr.mxu1 %v1418_v9  ;;  %v3509_v38 = vsel %vm837_vm1, 0.0, %v804_v27  ;;  %v3512_v41 = vsel %vm902_vm3, %v909_v25, %v910_v11  ;;  %v953_v45 = vrot.slane %v3492_v17, 2  ;;  %v807_v56 = vrot.slane %v773_v15, 7 }
 0x139   :  { %2406 = vmatpush3.msra.mxu1 %v1402_v13  ;;  %v715_v18 = vmax.f32 %v3358_v20, 0.0  ;;  %v956_v61 = vrot.slane %v3464_v60, 2  ;;  %v806_v63 = vrot.slane %v772_v23, 7  ;;  %v2752_v19 = vpack.i.bf16 %v3509_v38, %v3512_v41 }
 0x13a   :  { %v625_v12 = vpop.f32.mrf.mxu0  ;;  %2407 = vmatprep.subr.mxu1 %v1417_v1  ;;  %v952_v7 = vrot.slane %v3509_v38, 2  ;;  %v714_v20 = vmax.f32 %v3360_v32, 0.0  ;;  %v717_v60 = vmax.f32 %v3362_v33, 0.0  ;;  %v759_v9 = vmax.f32 %v711_v52, %v727_v40 }
 0x13b   :  { %v728_v16 = vmax.f32 %v625_v12, 0.0  ;;  %2408 = vmatpush3.msra.mxu1 %v1401_v34  ;;  %v955_v11 = vrot.slane %v3452_v53, 2  ;;  %v3537_v13 = vsel %vm837_vm1, 0.0, %v807_v56  ;;  %v3540_v15 = vsel %vm837_vm1, %v807_v56, 0.0  ;;  %2753 = vrot.lane.b32.xlu1 %v2752_v19, %s2993_s9 }
 0x13c   :  { %v2664_v36 = vpop.f32.mrf.mxu0  ;;  %2409 = vmatprep.subr.mxu1 %v1416_v31  ;;  %v954_v32 = vsel %vm948_vm2, %v952_v7, %v953_v45  ;;  %v716_v33 = vmax.f32 %v3364_v35, 0.0  ;;  %v3548_v1 = vsel %vm837_vm1, 0.0, %v806_v63  ;;  %v726_v34 = vmax.f32 %v3458_v57, 0.0 }
 0x13d   :  { %v3506_v26 = vmax.f32 %v712_v21, %v728_v16  ;;  %v731_v5 = vmax.f32 %v2664_v36, 0.0  ;;  %2410 = vmatpush3.msra.mxu1 %v1400_v49  ;;  %v2762_v21 = vpack.i.bf16 %v3500_v37, %v954_v32  ;;  %v907_v36 = vrot.slane %v3492_v17, 1 }
 0x13e   :  { %v635_v43 = vpop.f32.mrf.mxu0  ;;  %2411 = vmatprep.subr.mxu1 %v1415_v59  ;;  %v3558_v40 = vsel %vm948_vm2, %v955_v11, %v956_v61  ;;  %v916_v35 = vrot.slane %v3540_v15, 1  ;;  %v775_v57 = vmax.f32 %v3320_v42, %v759_v9  ;;  %v2772_v45 = vpack.i.bf16 %v954_v32, %v3548_v1 }
 0x13f   :  { %v776_v27 = vmax.f32 %v3326_v54, %v3506_v26  ;;  %v730_v8 = vmax.f32 %v635_v43, 0.0  ;;  %v3543_v16 = vmax.f32 %v715_v18, %v731_v5  ;;  %2412 = vmatpush3.msra.mxu1 %v1399_v28  ;;  %2763 = vrot.lane.b32.xlu0 %v2762_v21, %s2994_s10  ;;  %v2757_v49 = vpack.i.bf16 %v3558_v40, %v3537_v13 }
 0x140   :  { %v2667_v3 = vpop.f32.mrf.mxu0  ;;  %v906_v59 = vrot.slane %v3509_v38, 1  ;;  %v915_v28 = vrot.slane %v3537_v13, 1  ;;  %v713_v5 = vmax.f32 %v3354_v29, 0.0  ;;  %v758_v7 = vmax.f32 %v710_v30, %v726_v34 }
 0x141   :  { %v3551_v23 = vmax.f32 %v714_v20, %v730_v8  ;;  %v779_v31 = vmax.f32 %v3328_v58, %v3543_v16  ;;  %v733_v17 = vmax.f32 %v2667_v3, 0.0  ;;  %2758 = vrot.lane.b32.xlu1 %v2757_v49, %s2992_s17  ;;  %v719_v8 = vmax.f32 %v3372_v39, 0.0 }
 0x142   :  { %v645_v12 = vpop.f32.mrf.mxu0  ;;  %v3577_v42 = vsel %vm902_vm3, %v906_v59, %v907_v36  ;;  %v718_v20 = vmax.f32 %v3383_v44, 0.0  ;;  %v858_v9 = vsel %vm837_vm1, %v806_v63, 0.0  ;;  %v962_v11 = vrot.slane %v3540_v15, 2 }
 0x143   :  { %v778_v43 = vmax.f32 %v3330_v62, %v3551_v23  ;;  %v732_v56 = vmax.f32 %v645_v12, 0.0  ;;  %v3570_v18 = vmax.f32 %v717_v60, %v733_v17  ;;  %v729_v60 = vmax.f32 %v3471_v4, 0.0  ;;  %2773 = vrot.lane.b32.xlu0 %v2772_v45, %s2992_s17 }
 0x144   :  { %v2670_v25 = vpop.f32.mrf.mxu0  ;;  %v809_v12 = vrot.slane %v775_v57, 7  ;;  %v2767_v39 = vpack.i.bf16 %v3577_v42, %v3558_v40  ;;  %v3594_v63 = vsel %vm902_vm3, %v915_v28, %v916_v35  ;;  %v774_v15 = vmax.f32 %v3322_v46, %v758_v7 }
 0x145   :  { %v735_v61 = vmax.f32 %v2670_v25, 0.0  ;;  %v3574_v3 = vmax.f32 %v716_v33, %v732_v56  ;;  %v781_v29 = vmax.f32 %v3332_v2, %v3570_v18  ;;  %v959_v33 = vrot.slane %v858_v9, 2 }
 0x146   :  { %v655_v52 = vpop.f32.mrf.mxu0  ;;  %v2777_v21 = vpack.i.bf16 %v3548_v1, %v3594_v63  ;;  %v961_v25 = vrot.slane %v3537_v13, 2  ;;  %2768 = vrot.lane.b32.xlu1 %v2767_v39, %s2994_s10  ;;  %v958_v49 = vrot.slane %v3548_v1, 2  ;;  %v721_v17 = vmax.f32 %v3391_v48, 0.0 }
 0x147   :  { %v734_v19 = vmax.f32 %v655_v52, 0.0  ;;  %v780_v30 = vmax.f32 %v3334_v6, %v3574_v3  ;;  %v3591_v44 = vmax.f32 %v719_v8, %v735_v61  ;;  %v3610_v46 = vsel %vm837_vm1, 0.0, %v809_v12 }
 0x148   :  { %v2673_v32 = vpop.f32.mrf.mxu0  ;;  %v761_v52 = vmax.f32 %v713_v5, %v729_v60  ;;  %2778 = vrot.lane.b32.xlu0 %v2777_v21, %s2993_s9  ;;  %v913_v45 = vrot.slane %v858_v9, 1  ;;  %v861_v56 = vsel %vm837_vm1, %v809_v12, 0.0  ;;  %v808_v59 = vrot.slane %v774_v15, 7 }
 0x149   :  { %v3596_v4 = vmax.f32 %v718_v20, %v734_v19  ;;  %v783_v36 = vmax.f32 %v3336_v10, %v3591_v44  ;;  %v737_v35 = vmax.f32 %v2673_v32, 0.0  ;;  %v3615_v61 = vsel %vm948_vm2, %v961_v25, %v962_v11 }
 0x14a   :  { %v665_v57 = vpop.f32.mrf.mxu0  ;;  %v2782_v19 = vpack.i.bf16 %v3615_v61, %v3610_v46  ;;  %v3622_v48 = vsel %vm948_vm2, %v958_v49, %v959_v33  ;;  %v912_v5 = vrot.slane %v3548_v1, 1  ;;  %v720_v8 = vmax.f32 %v3400_v55, 0.0 }
 0x14b   :  { %v782_v34 = vmax.f32 %v3339_v14, %v3596_v4  ;;  %v3617_v28 = vmax.f32 %v721_v17, %v737_v35  ;;  %v736_v7 = vmax.f32 %v665_v57, 0.0  ;;  %v777_v20 = vmax.f32 %v3324_v50, %v761_v52 }
 0x14c   :  { %v922_v9 = vrot.slane %v861_v56, 1  ;;  %2783 = vrot.lane.b32.xlu1 %v2782_v19, %s2992_s17  ;;  %v2792_v11 = vpack.i.bf16 %v3512_v41, %v3622_v48  ;;  %v3635_v32 = vsel %vm902_vm3, %v912_v5, %v913_v45  ;;  %v968_v39 = vrot.slane %v861_v56, 2  ;;  %v3665_v19 = vld [vmem:[%s4457_s2 + $0x118] sm:$0xff] }
 0x14d   :  { %v785_v60 = vmax.f32 %v3342_v22, %v3617_v28  ;;  %v3632_v12 = vmax.f32 %v720_v8, %v736_v7  ;;  %v3638_v33 = vsel %vm837_vm1, 0.0, %v808_v59  ;;  %v2787_v50 = vpack.i.bf16 %v3452_v53, %v3635_v32  ;;  %2674 = vmatprep.subr.mxu1 %v3665_v19 }
 0x14e   :  { %v921_v55 = vrot.slane %v3610_v46, 1  ;;  %v860_v15 = vsel %vm837_vm1, %v808_v59, 0.0  ;;  %v811_v21 = vrot.slane %v777_v20, 7  ;;  %2793 = vrot.lane.b32.xlu0 %v2792_v11, %s2994_s10  ;;  %v967_v35 = vrot.slane %v3610_v46, 2 }
 0x14f   :  { %v784_v25 = vmax.f32 %v3344_v24, %v3632_v12  ;;  %v2802_v49 = vpack.i.bf16 %v3622_v48, %v3638_v33  ;;  %v965_v17 = vrot.slane %v860_v15, 2  ;;  %v2797_v52 = vpack.i.bf16 %v3635_v32, %v3615_v61 }
 0x150   :  { %2788 = vrot.lane.b32.xlu1 %v2787_v50, %s2993_s9  ;;  %v3654_v57 = vsel %vm902_vm3, %v921_v55, %v922_v9  ;;  %v964_v45 = vrot.slane %v3638_v33, 2  ;;  %v846_v56 = vsel %vm837_vm1, 0.0, %v811_v21  ;;  %v3660_v59 = vsel %vm948_vm2, %v967_v35, %v968_v39 }
 0x151   :  { %v2807_v7 = vpack.i.bf16 %v3638_v33, %v3654_v57  ;;  %v810_v5 = vrot.slane %v776_v27, 7  ;;  %v2812_v8 = vpack.i.bf16 %v3660_v59, %v846_v56  ;;  %v919_v9 = vrot.slane %v860_v15, 1 }
 0x152   :  { %2803 = vrot.lane.b32.xlu0 %v2802_v49, %s2992_s17  ;;  %v3676_v20 = vsel %vm948_vm2, %v964_v45, %v965_v17  ;;  %v863_v11 = vsel %vm837_vm1, %v811_v21, 0.0  ;;  %v918_v39 = vrot.slane %v3638_v33, 1  ;;  %v2817_v26 = vpack.i.bf16 %v846_v56, %v3500_v37 }
 0x153   :  { %v2827_v50 = vpack.i.bf16 %v3594_v63, %v3676_v20  ;;  %v999_v55 = vrot.slane %v863_v11, 1  ;;  %v3685_v54 = vsel %vm837_vm1, 0.0, %v810_v5  ;;  %v998_v27 = vrot.slane %v846_v56, 1 }
 0x154   :  { %2798 = vrot.lane.b32.xlu1 %v2797_v52, %s2994_s10  ;;  %v862_v15 = vsel %vm837_vm1, %v810_v5, 0.0  ;;  %v3691_v21 = vsel %vm902_vm3, %v918_v39, %v919_v9  ;;  %v2837_v35 = vpack.i.bf16 %v3676_v20, %v3685_v54  ;;  %v970_v37 = vrot.slane %v3685_v54, 2 }
 0x155   :  { %v971_v49 = vrot.slane %v862_v15, 2  ;;  %v2822_v17 = vpack.i.bf16 %v3537_v13, %v3691_v21  ;;  %v3699_v52 = vsel %vm902_vm3, %v998_v27, %v999_v55  ;;  %v925_v45 = vrot.slane %v862_v15, 1 }
 0x156   :  { %2808 = vrot.lane.b32.xlu0 %v2807_v7, %s2993_s9  ;;  %v813_v7 = vrot.slane %v779_v31, 7  ;;  %v924_v5 = vrot.slane %v3685_v54, 1  ;;  %v812_v9 = vrot.slane %v778_v43, 7  ;;  %v2832_v39 = vpack.i.bf16 %v3691_v21, %v3660_v59 }
 0x157   :  { %v814_v62 = vrot.slane %v780_v30, 7  ;;  %v1021_v23 = vrot.slane %v863_v11, 2  ;;  %v1020_v55 = vrot.slane %v846_v56, 2 }
 0x158   :  { %2813 = vrot.lane.b32.xlu1 %v2812_v8, %s2992_s17  ;;  %v2842_v8 = vpack.i.bf16 %v3685_v54, %v3699_v52  ;;  %v3719_v58 = vsel %vm837_vm1, 0.0, %v813_v7  ;;  %v865_v16 = vsel %vm837_vm1, %v813_v7, 0.0  ;;  %v3724_v31 = vsel %vm902_vm3, %v924_v5, %v925_v45 }
 0x159   :  { %v864_v27 = vsel %vm837_vm1, %v812_v9, 0.0  ;;  %v2847_v15 = vpack.i.bf16 %v3610_v46, %v3724_v31  ;;  %v3741_v6 = vsel %vm837_vm1, 0.0, %v814_v62  ;;  %v866_v3 = vsel %vm837_vm1, %v814_v62, 0.0 }
 0x15a   :  { %2828 = vrot.lane.b32.xlu0 %v2827_v50, %s2994_s10  ;;  %v3716_v50 = vsel %vm948_vm2, %v970_v37, %v971_v49  ;;  %v3737_v49 = vsel %vm837_vm1, 0.0, %v812_v9  ;;  %v974_v30 = vrot.slane %v864_v27, 2  ;;  %v3748_v11 = vsel %vm948_vm2, %v1020_v55, %v1021_v23 }
 0x15b   :  { %v2852_v43 = vpack.i.bf16 %v3654_v57, %v3716_v50  ;;  %v2862_v56 = vpack.i.bf16 %v3716_v50, %v3412_v0  ;;  %v2857_v37 = vpack.i.bf16 %v3724_v31, %v3748_v11  ;;  %v973_v7 = vrot.slane %v3737_v49, 2 }
 0x15c   :  { %2818 = vrot.lane.b32.xlu1 %v2817_v26, %s2993_s9  ;;  %v931_v26 = vrot.slane %v865_v16, 1  ;;  %v980_v5 = vrot.slane %v866_v3, 2  ;;  %v977_v9 = vrot.slane %v865_v16, 2  ;;  %v928_v2 = vrot.slane %v864_v27, 1 }
 0x15d   :  { %v2882_v23 = vpack.i.bf16 %v3741_v6, %v3719_v58  ;;  %v934_v55 = vrot.slane %v866_v3, 1  ;;  %v933_v27 = vrot.slane %v3741_v6, 1 }
 0x15e   :  { %2838 = vrot.lane.b32.xlu0 %v2837_v35, %s2992_s17  ;;  %v930_v35 = vrot.slane %v3719_v58, 1 }
 0x15f   :  { %v3794_v14 = vsel %vm902_vm3, %v933_v27, %v934_v55 }
 0x160   :  { %2823 = vrot.lane.b32.xlu1 %v2822_v17, %s2993_s9  ;;  %v815_v17 = vrot.slane %v781_v29, 7  ;;  %v3756_v45 = vsel %vm902_vm3, %v930_v35, %v931_v26  ;;  %v927_v29 = vrot.slane %v3737_v49, 1 }
 0x161   :  { %v2867_v18 = vpack.i.bf16 %v3737_v49, %v3756_v45 }
 0x162   :  { %2843 = vrot.lane.b32.xlu0 %v2842_v8, %s2993_s9  ;;  %v979_v8 = vrot.slane %v3741_v6, 2  ;;  %v3767_v62 = vsel %vm837_vm1, 0.0, %v815_v17  ;;  %v867_v16 = vsel %vm837_vm1, %v815_v17, 0.0  ;;  %v3787_v3 = vsel %vm902_vm3, %v927_v29, %v928_v2 }
 0x163   :  { %v936_v2 = vrot.slane %v3767_v62, 1 }
 0x164   :  { %2833 = vrot.lane.b32.xlu1 %v2832_v39, %s2994_s10  ;;  %v976_v39 = vrot.slane %v3719_v58, 2  ;;  %v3775_v26 = vsel %vm948_vm2, %v979_v8, %v980_v5  ;;  %v817_v8 = vrot.slane %v783_v36, 7 }
 0x165   :  { %v2897_v17 = vpack.i.bf16 %v3775_v26, %v3787_v3 }
 0x166   :  { %2853 = vrot.lane.b32.xlu0 %v2852_v43, %s2994_s10  ;;  %v975_v43 = vsel %vm948_vm2, %v973_v7, %v974_v30  ;;  %v3783_v35 = vsel %vm948_vm2, %v976_v39, %v977_v9  ;;  %v937_v7 = vrot.slane %v867_v16, 1  ;;  %v2902_v9 = vpack.i.bf16 %v3719_v58, %v3794_v14 }
 0x167   :  { %v2872_v30 = vpack.i.bf16 %v3783_v35, %v975_v43  ;;  %v2877_v5 = vpack.i.bf16 %v3767_v62, %v975_v43  ;;  %v3817_v10 = vsel %vm837_vm1, 0.0, %v817_v8  ;;  %v869_v43 = vsel %vm837_vm1, %v817_v8, 0.0 }
 0x168   :  { %2848 = vrot.lane.b32.xlu1 %v2847_v15, %s2993_s9  ;;  %v816_v15 = vrot.slane %v782_v34, 7  ;;  %v3822_v36 = vsel %vm902_vm3, %v936_v2, %v937_v7  ;;  %v943_v12 = vrot.slane %v869_v43, 1  ;;  %v942_v2 = vrot.slane %v3817_v10, 1 }
 0x16a   :  { %2863 = vrot.lane.b32.xlu0 %v2862_v56, %s2992_s17  ;;  %v983_v56 = vrot.slane %v867_v16, 2  ;;  %v3797_v4 = vsel %vm837_vm1, 0.0, %v816_v15  ;;  %v868_v34 = vsel %vm837_vm1, %v816_v15, 0.0  ;;  %v818_v15 = vrot.slane %v784_v25, 7 }
 0x16b   :  { %v985_v29 = vrot.slane %v3797_v4, 2  ;;  %v2912_v44 = vpack.i.bf16 %v3797_v4, %v3783_v35  ;;  %v940_v16 = vrot.slane %v868_v34, 1  ;;  %v939_v27 = vrot.slane %v3797_v4, 1 }
 0x16c   :  { %2858 = vrot.lane.b32.xlu1 %v2857_v37, %s2994_s10  ;;  %v982_v37 = vrot.slane %v3767_v62, 2  ;;  %v3844_v7 = vsel %vm837_vm1, 0.0, %v818_v15  ;;  %v870_v24 = vsel %vm837_vm1, %v818_v15, 0.0  ;;  %v2907_v25 = vpack.i.bf16 %v3817_v10, %v3775_v26 }
 0x16e   :  { %2868 = vrot.lane.b32.xlu0 %v2867_v18, %s2993_s9  ;;  %v3808_v39 = vsel %vm948_vm2, %v982_v37, %v983_v56  ;;  %v986_v18 = vrot.slane %v868_v34, 2  ;;  %v989_v56 = vrot.slane %v869_v43, 2  ;;  %v988_v37 = vrot.slane %v3817_v10, 2 }
 0x16f   :  { %v3841_v34 = vsel %vm902_vm3, %v939_v27, %v940_v16  ;;  %v2942_v28 = vpack.i.bf16 %v3844_v7, %v3808_v39  ;;  %v946_v43 = vrot.slane %v870_v24, 1  ;;  %v945_v27 = vrot.slane %v3844_v7, 1 }
 0x170   :  { %2883 = vrot.lane.b32.xlu1 %v2882_v23, %s2992_s17  ;;  %v2887_v23 = vpack.i.bf16 %v3808_v39, %v3756_v45  ;;  %v3827_v55 = vsel %vm948_vm2, %v985_v29, %v986_v18  ;;  %v2932_v8 = vpack.i.bf16 %v3767_v62, %v3841_v34  ;;  %v992_v18 = vrot.slane %v870_v24, 2 }
 0x171   :  { %v991_v29 = vrot.slane %v3844_v7, 2 }
 0x172   :  { %2873 = vrot.lane.b32.xlu0 %v2872_v30, %s2994_s10  ;;  %v2892_v30 = vpack.i.bf16 %v3741_v6, %v3822_v36 }
 0x173   :  { %v3873_v16 = vsel %vm948_vm2, %v991_v29, %v992_v18 }
 0x174   :  { %2898 = vrot.lane.b32.xlu1 %v2897_v17, %s2994_s10  ;;  %v2927_v17 = vpack.i.bf16 %v3827_v55, %v3794_v14  ;;  %4467 = vst [vmem:[#allocation5_spill] sm:$0xff] %v3873_v16 }
 0x176   :  { %2878 = vrot.lane.b32.xlu0 %v2877_v5, %s2992_s17  ;;  %v819_v5 = vrot.slane %v785_v60, 7  ;;  %v3868_v60 = vsel %vm902_vm3, %v942_v2, %v943_v12 }
 0x177   :  { %v2922_v15 = vpack.i.bf16 %v3797_v4, %v3868_v60 }
 0x178   :  { %2903 = vrot.lane.b32.xlu1 %v2902_v9, %s2993_s9  ;;  %v3856_v9 = vsel %vm948_vm2, %v988_v37, %v989_v56  ;;  %v854_v22 = vsel %vm837_vm1, 0.0, %v819_v5  ;;  %v2952_v56 = vpack.i.bf16 %v3873_v16, %v3841_v34  ;;  %v3883_v37 = vsel %vm902_vm3, %v945_v27, %v946_v43 }
 0x179   :  { %v2937_v24 = vpack.i.bf16 %v854_v22, %v3827_v55 }
 0x17a   :  { %2888 = vrot.lane.b32.xlu0 %v2887_v23, %s2994_s10  ;;  %v2917_v23 = vpack.i.bf16 %v3856_v9, %v3822_v36 }
 0x17c   :  { %2913 = vrot.lane.b32.xlu1 %v2912_v44, %s2992_s17  ;;  %v871_v44 = vsel %vm837_vm1, %v819_v5, 0.0 }
 0x17d   :  { %v1002_v12 = vrot.slane %v871_v44, 1 }
 0x17e   :  { %2893 = vrot.lane.b32.xlu0 %v2892_v30, %s2993_s9  ;;  %v1024_v30 = vrot.slane %v871_v44, 2 }
 0x180   :  { %2928 = vrot.lane.b32.xlu1 %v2927_v17, %s2994_s10  ;;  %v1023_v17 = vrot.slane %v854_v22, 2 }
 0x182   :  { %2908 = vrot.lane.b32.xlu0 %v2907_v25, %s2992_s17  ;;  %v2957_v25 = vpack.i.bf16 %v3817_v10, %v3883_v37  ;;  %v3890_v5 = vsel %vm948_vm2, %v1023_v17, %v1024_v30 }
 0x183   :  { %4468 = vst [vmem:[#allocation6_spill] sm:$0xff] %v3890_v5  ;;  %v2947_v2 = vpack.i.bf16 %v3890_v5, %v3868_v60 }
 0x184   :  { %2933 = vrot.lane.b32.xlu1 %v2932_v8, %s2993_s9  ;;  %v1001_v8 = vrot.slane %v854_v22, 1 }
 0x186   :  { %2918 = vrot.lane.b32.xlu0 %v2917_v23, %s2994_s10  ;;  %v3897_v18 = vsel %vm902_vm3, %v1001_v8, %v1002_v12 }
 0x187   :  { %v2962_v29 = vpack.i.bf16 %v3844_v7, %v3897_v18 }
 0x188   :  { %2943 = vrot.lane.b32.xlu1 %v2942_v28, %s2992_s17 }
 0x18a   :  { %2923 = vrot.lane.b32.xlu0 %v2922_v15, %s2993_s9 }
 0x18c   :  { %2953 = vrot.lane.b32.xlu1 %v2952_v56, %s2994_s10 }
 0x18e   :  { %2938 = vrot.lane.b32.xlu0 %v2937_v24, %s2992_s17 }
 0x190   :  { %2958 = vrot.lane.b32.xlu1 %v2957_v25, %s2993_s9 }
 0x192   :  { %2948 = vrot.lane.b32.xlu0 %v2947_v2, %s2994_s10 }
 0x194   :  { %1097 = vrot.lane.b32.xlu1 %v3856_v9, %s2992_s17 }
 0x196   :  { %2963 = vrot.lane.b32.xlu0 %v2962_v29, %s2993_s9 }
 0x198   :  { %1054 = vrot.lane.b32.xlu1 %v3883_v37, %s2994_s10 }
 0x19a   :  { %1099 = vrot.lane.b32.xlu0 %v3873_v16, %s2992_s17 }
 0x19c   :  { %1146 = vrot.lane.b32.xlu1 %v854_v22, %s2993_s9 }
 0x1aa   :  { %v2749_v23 = vpop.permute.xlu0 %2748 }
 0x1ab   :  { %v2751_v15 = vunpack.i.h.bf16 %v2749_v23  ;;  %v2750_v30 = vunpack.i.l.bf16 %v2749_v23 }
 0x1ad   :  { %v2754_v28 = vpop.permute.xlu1 %2753 }
 0x1ae   :  { %v2756_v17 = vunpack.i.h.bf16 %v2754_v28  ;;  %v2755_v24 = vunpack.i.l.bf16 %v2754_v28  ;;  %v1433_v28 = vld [vmem:[%s4457_s2 + $0x110] sm:$0xff] }
 0x1b1   :  { %v2764_v44 = vpop.permute.xlu0 %2763 }
 0x1b2   :  { %v2766_v43 = vunpack.i.h.bf16 %v2764_v44  ;;  %v2765_v27 = vunpack.i.l.bf16 %v2764_v44  ;;  %v1431_v44 = vld [vmem:[%s4457_s2 + $0x100] sm:$0xff] }
 0x1b3   :  { %v2759_v56 = vpop.permute.xlu1 %2758 }
 0x1b4   :  { %v1351_v12 = vsel %vm1302_vm4, %v3577_v42, %v2765_v27  ;;  %v1303_v25 = vsel %vm1302_vm4, %v3412_v0, %v2766_v43  ;;  %v1432_v0 = vld [vmem:[%s4457_s2 + $0x108] sm:$0xff] }
 0x1b5   :  { %v1367_v22 = vsel %vm1318_vm5, %v1351_v12, %v2750_v30  ;;  %v3916_v8 = vsel %vm1318_vm5, %v1303_v25, %v2751_v15  ;;  %v2774_v2 = vpop.permute.xlu0 %2773 }
 0x1b6   :  { %v1383_v29 = vsel %vm1334_vm6, %v1367_v22, %v2755_v24  ;;  %v1335_v23 = vsel %vm1334_vm6, %v3916_v8, %v2756_v17  ;;  %v2776_v12 = vunpack.i.h.bf16 %v2774_v2  ;;  %v2775_v25 = vunpack.i.l.bf16 %v2774_v2 }
 0x1b7   :  { %1529 = vmatprep.mubr.f32.mxu1 %v1383_v29 }
 0x1b8   :  { %1530 = vmatmul.mubr.f32.vlgmr.msra.gmra.mxu1 %v1335_v23  ;;  %v2769_v42 = vpop.permute.xlu1 %2768 }
 0x1b9   :  { %2675 = vmatpush3.msra.mxu1 %v3665_v19  ;;  %v2771_v27 = vunpack.i.h.bf16 %v2769_v42  ;;  %v2770_v15 = vunpack.i.l.bf16 %v2769_v42 }
 0x1ba   :  { %2676 = vmatprep.subr.mxu1 %v1433_v28  ;;  %v2779_v43 = vpop.permute.xlu0 %2778 }
 0x1bb   :  { %2677 = vmatpush3.msra.mxu1 %v1433_v28  ;;  %v1352_v17 = vsel %vm1302_vm4, %v3512_v41, %v2770_v15  ;;  %v1304_v24 = vsel %vm1302_vm4, %v3509_v38, %v2771_v27  ;;  %v2761_v28 = vunpack.i.h.bf16 %v2759_v56  ;;  %v2780_v38 = vunpack.i.l.bf16 %v2779_v43 }
 0x1bc   :  { %2678 = vmatprep.subr.mxu1 %v1432_v0  ;;  %v1368_v5 = vsel %vm1318_vm5, %v1352_v17, %v2775_v25 }
 0x1bd   :  { %2679 = vmatpush3.msra.mxu1 %v1432_v0  ;;  %v2760_v0 = vunpack.i.l.bf16 %v2759_v56 }
 0x1be   :  { %2680 = vmatprep.subr.mxu1 %v1431_v44  ;;  %v3931_v30 = vpop.permute.xlu1 %2783 }
 0x1bf   :  { %2681 = vmatpush3.msra.mxu1 %v1431_v44  ;;  %v1320_v44 = vsel %vm1318_vm5, %v1304_v24, %v2776_v12  ;;  %v2781_v12 = vunpack.i.h.bf16 %v2779_v43 }
 0x1c0   :  { %v2794_v19 = vpop.permute.xlu0 %2793 }
 0x1c1   :  { %v2796_v22 = vunpack.i.h.bf16 %v2794_v19  ;;  %v2795_v29 = vunpack.i.l.bf16 %v2794_v19 }
 0x1c2   :  { %v2789_v23 = vpop.permute.xlu1 %2788 }
 0x1c3   :  { %v2791_v51 = vunpack.i.h.bf16 %v2789_v23  ;;  %v2790_v42 = vunpack.i.l.bf16 %v2789_v23  ;;  %v1353_v16 = vsel %vm1302_vm4, %v3635_v32, %v2795_v29  ;;  %v1305_v41 = vsel %vm1302_vm4, %v3452_v53, %v2796_v22 }
 0x1c4   :  { %v2804_v27 = vpop.permute.xlu0 %2803  ;;  %v1369_v56 = vsel %vm1318_vm5, %v1353_v16, %v2760_v0  ;;  %v1321_v24 = vsel %vm1318_vm5, %v1305_v41, %v2761_v28 }
 0x1c5   :  { %v1384_v2 = vsel %vm1334_vm6, %v1368_v5, %v2790_v42  ;;  %v1336_v15 = vsel %vm1334_vm6, %v1320_v44, %v2791_v51  ;;  %v1385_v17 = vsel %vm1334_vm6, %v1369_v56, %v2780_v38  ;;  %v1337_v53 = vsel %vm1334_vm6, %v1321_v24, %v2781_v12 }
 0x1c6   :  { %v2799_v19 = vpop.permute.xlu1 %2798  ;;  %1534 = vmatprep.mubr.f32.mxu1 %v1384_v2  ;;  %v2785_v44 = vunpack.i.l.bf16 %v3931_v30  ;;  %v2806_v41 = vunpack.i.h.bf16 %v2804_v27  ;;  %v2805_v38 = vunpack.i.l.bf16 %v2804_v27 }
 0x1c7   :  { %1535 = vmatmul.mubr.f32.gmra.mxu1 %v1336_v15  ;;  %v2801_v5 = vunpack.i.h.bf16 %v2799_v19  ;;  %v2800_v22 = vunpack.i.l.bf16 %v2799_v19 }
 0x1c8   :  { %1539 = vmatprep.mubr.f32.mxu1 %v1385_v17  ;;  %v2809_v32 = vpop.permute.xlu0 %2808 }
 0x1c9   :  { %v1354_v42 = vsel %vm1302_vm4, %v3594_v63, %v2800_v22  ;;  %v1306_v43 = vsel %vm1302_vm4, %v3548_v1, %v2801_v5  ;;  %v2786_v1 = vunpack.i.h.bf16 %v3931_v30  ;;  %v2810_v12 = vunpack.i.l.bf16 %v2809_v32 }
 0x1ca   :  { %v3948_v25 = vpop.permute.xlu1 %2813  ;;  %v1370_v19 = vsel %vm1318_vm5, %v1354_v42, %v2805_v38  ;;  %v1322_v17 = vsel %vm1318_vm5, %v1306_v43, %v2806_v41  ;;  %v2811_v43 = vunpack.i.h.bf16 %v2809_v32 }
 0x1cb   :  { %1540 = vmatmul.mubr.f32.gmra.mxu1 %v1337_v53 }
 0x1cc   :  { %v2829_v51 = vpop.permute.xlu0 %2828 }
 0x1cd   :  { %v2830_v29 = vunpack.i.l.bf16 %v2829_v51  ;;  %v2831_v23 = vunpack.i.h.bf16 %v2829_v51 }
 0x1ce   :  { %v3951_v16 = vpop.permute.xlu1 %2818 }
 0x1cf   :  { %v1355_v28 = vsel %vm1302_vm4, %v3691_v21, %v2830_v29  ;;  %v1307_v63 = vsel %vm1302_vm4, %v3537_v13, %v2831_v23 }
 0x1d0   :  { %v2839_v0 = vpop.permute.xlu0 %2838  ;;  %v1371_v24 = vsel %vm1318_vm5, %v1355_v28, %v2785_v44  ;;  %v1323_v42 = vsel %vm1318_vm5, %v1307_v63, %v2786_v1 }
 0x1d1   :  { %v1387_v29 = vsel %vm1334_vm6, %v1371_v24, %v2810_v12  ;;  %v2841_v13 = vunpack.i.h.bf16 %v2839_v0  ;;  %v2840_v44 = vunpack.i.l.bf16 %v2839_v0 }
 0x1d2   :  { %v2824_v2 = vpop.permute.xlu1 %2823 }
 0x1d3   :  { %v2826_v15 = vunpack.i.h.bf16 %v2824_v2  ;;  %v2825_v56 = vunpack.i.l.bf16 %v2824_v2 }
 0x1d4   :  { %v2844_v21 = vpop.permute.xlu0 %2843 }
 0x1d5   :  { %v1386_v53 = vsel %vm1334_vm6, %v1370_v19, %v2825_v56  ;;  %v1338_v27 = vsel %vm1334_vm6, %v1322_v17, %v2826_v15  ;;  %v1339_v15 = vsel %vm1334_vm6, %v1323_v42, %v2811_v43  ;;  %v2816_v56 = vunpack.i.h.bf16 %v3948_v25 }
 0x1d6   :  { %v2834_v5 = vpop.permute.xlu1 %2833  ;;  %1544 = vmatprep.mubr.f32.mxu1 %v1386_v53  ;;  %v2815_v19 = vunpack.i.l.bf16 %v3948_v25  ;;  %v2845_v63 = vunpack.i.l.bf16 %v2844_v21  ;;  %v2820_v42 = vunpack.i.l.bf16 %v3951_v16 }
 0x1d7   :  { %v2836_v22 = vunpack.i.h.bf16 %v2834_v5  ;;  %v2835_v51 = vunpack.i.l.bf16 %v2834_v5  ;;  %1545 = vmatmul.mubr.f32.gmra.mxu1 %v1338_v27 }
 0x1d8   :  { %1549 = vmatprep.mubr.f32.mxu1 %v1387_v29  ;;  %v2854_v23 = vpop.permute.xlu0 %2853  ;;  %v2846_v29 = vunpack.i.h.bf16 %v2844_v21 }
 0x1d9   :  { %v1356_v30 = vsel %vm1302_vm4, %v3654_v57, %v2835_v51  ;;  %v1308_v28 = vsel %vm1302_vm4, %v3638_v33, %v2836_v22  ;;  %v2856_v41 = vunpack.i.h.bf16 %v2854_v23  ;;  %v2855_v38 = vunpack.i.l.bf16 %v2854_v23 }
 0x1da   :  { %v2849_v2 = vpop.permute.xlu1 %2848  ;;  %v1372_v24 = vsel %vm1318_vm5, %v1356_v30, %v2840_v44  ;;  %v1324_v57 = vsel %vm1318_vm5, %v1308_v28, %v2841_v13 }
 0x1db   :  { %v2851_v32 = vunpack.i.h.bf16 %v2849_v2  ;;  %v2850_v17 = vunpack.i.l.bf16 %v2849_v2  ;;  %1550 = vmatmul.mubr.f32.gmra.mxu1 %v1339_v15  ;;  %v1357_v33 = vsel %vm1302_vm4, %v3724_v31, %v2855_v38  ;;  %v1309_v0 = vsel %vm1302_vm4, %v3610_v46, %v2856_v41 }
 0x1dc   :  { %v3983_v1 = vpop.permute.xlu0 %2863  ;;  %v1373_v53 = vsel %vm1318_vm5, %v1357_v33, %v2815_v19  ;;  %v1325_v31 = vsel %vm1318_vm5, %v1309_v0, %v2816_v56  ;;  %v2821_v2 = vunpack.i.h.bf16 %v3951_v16  ;;  %v1963_v16 = vld [vmem:[%s4458_s3 + $0x1e8] sm:$0xff] }
 0x1dd   :  { %v1388_v12 = vsel %vm1334_vm6, %v1372_v24, %v2850_v17  ;;  %v1340_v25 = vsel %vm1334_vm6, %v1324_v57, %v2851_v32  ;;  %v1389_v51 = vsel %vm1334_vm6, %v1373_v53, %v2845_v63  ;;  %v2865_v46 = vunpack.i.l.bf16 %v3983_v1 }
 0x1de   :  { %v2859_v27 = vpop.permute.xlu1 %2858  ;;  %1554 = vmatprep.mubr.f32.mxu1 %v1388_v12  ;;  %v2866_v43 = vunpack.i.h.bf16 %v3983_v1  ;;  %v1341_v44 = vsel %vm1334_vm6, %v1325_v31, %v2846_v29 }
 0x1df   :  { %v2861_v5 = vunpack.i.h.bf16 %v2859_v27  ;;  %v2860_v22 = vunpack.i.l.bf16 %v2859_v27  ;;  %1555 = vmatmul.mubr.f32.gmra.mxu1 %v1340_v25 }
 0x1e0   :  { %1559 = vmatprep.mubr.f32.mxu1 %v1389_v51  ;;  %v2869_v13 = vpop.permute.xlu0 %2868 }
 0x1e1   :  { %v1358_v23 = vsel %vm1302_vm4, %v3699_v52, %v2860_v22  ;;  %v1310_v30 = vsel %vm1302_vm4, %v3685_v54, %v2861_v5  ;;  %v2871_v32 = vunpack.i.h.bf16 %v2869_v13  ;;  %v2870_v57 = vunpack.i.l.bf16 %v2869_v13 }
 0x1e2   :  { %v2884_v28 = vpop.permute.xlu1 %2883  ;;  %v1374_v21 = vsel %vm1318_vm5, %v1358_v23, %v2865_v46  ;;  %v1326_v38 = vsel %vm1318_vm5, %v1310_v30, %v2866_v43 }
 0x1e3   :  { %1560 = vmatmul.mubr.f32.gmra.mxu1 %v1341_v44  ;;  %v1390_v41 = vsel %vm1334_vm6, %v1374_v21, %v2820_v42  ;;  %v1342_v19 = vsel %vm1334_vm6, %v1326_v38, %v2821_v2  ;;  %v2885_v17 = vunpack.i.l.bf16 %v2884_v28  ;;  %v2886_v53 = vunpack.i.h.bf16 %v2884_v28 }
 0x1e4   :  { %1564 = vmatprep.mubr.f32.mxu1 %v1390_v41  ;;  %v2874_v52 = vpop.permute.xlu0 %2873 }
 0x1e5   :  { %v2876_v15 = vunpack.i.h.bf16 %v2874_v52  ;;  %v2875_v54 = vunpack.i.l.bf16 %v2874_v52 }
 0x1e6   :  { %v2899_v56 = vpop.permute.xlu1 %2898 }
 0x1e7   :  { %v2900_v24 = vunpack.i.l.bf16 %v2899_v56  ;;  %1565 = vmatmul.mubr.f32.gmra.mxu1 %v1342_v19  ;;  %v1359_v33 = vsel %vm1302_vm4, %v3787_v3, %v2875_v54  ;;  %v1360_v12 = vsel %vm1302_vm4, %v3756_v45, %v2876_v15  ;;  %v1343_v3 = vsel %vm1334_vm6, %v3916_v8, %v2871_v32 }
 0x1e8   :  { %v2879_v0 = vpop.permute.xlu0 %2878  ;;  %v1375_v63 = vsel %vm1318_vm5, %v1359_v33, %v2885_v17  ;;  %v2901_v29 = vunpack.i.h.bf16 %v2899_v56  ;;  %v1376_v43 = vsel %vm1318_vm5, %v1360_v12, %v2886_v53 }
 0x1e9   :  { %v1311_v25 = vsel %vm1302_vm4, %v3737_v49, %v2900_v24  ;;  %v2880_v27 = vunpack.i.l.bf16 %v2879_v0  ;;  %v1391_v5 = vsel %vm1334_vm6, %v1375_v63, %v2870_v57  ;;  %v2881_v44 = vunpack.i.h.bf16 %v2879_v0 }
 0x1ea   :  { %v2904_v22 = vpop.permute.xlu1 %2903  ;;  %1569 = vmatprep.mubr.f32.mxu1 %v1391_v5  ;;  %v1361_v8 = vsel %vm1302_vm4, %v3794_v14, %v2901_v29 }
 0x1eb   :  { %v2906_v51 = vunpack.i.h.bf16 %v2904_v22  ;;  %v2905_v31 = vunpack.i.l.bf16 %v2904_v22  ;;  %1570 = vmatmul.mubr.f32.gmra.mxu1 %v1343_v3  ;;  %v1327_v45 = vsel %vm1318_vm5, %v1311_v25, %v2880_v27  ;;  %v1377_v32 = vsel %vm1318_vm5, %v1361_v8, %v2881_v44 }
 0x1ec   :  { %v2889_v13 = vpop.permute.xlu0 %2888 }
 0x1ed   :  { %v1392_v49 = vsel %vm1334_vm6, %v1376_v43, %v2905_v31  ;;  %v1344_v23 = vsel %vm1334_vm6, %v1327_v45, %v2906_v51  ;;  %v2890_v30 = vunpack.i.l.bf16 %v2889_v13  ;;  %v2891_v38 = vunpack.i.h.bf16 %v2889_v13 }
 0x1ee   :  { %1574 = vmatprep.mubr.f32.mxu1 %v1392_v49  ;;  %v2914_v28 = vpop.permute.xlu1 %2913 }
 0x1ef   :  { %v2915_v21 = vunpack.i.l.bf16 %v2914_v28  ;;  %1575 = vmatmul.mubr.f32.gmra.mxu1 %v1344_v23  ;;  %v1312_v41 = vsel %vm1302_vm4, %v3719_v58, %v2890_v30  ;;  %v2916_v17 = vunpack.i.h.bf16 %v2914_v28  ;;  %v1362_v58 = vsel %vm1302_vm4, %v3822_v36, %v2891_v38 }
 0x1f0   :  { %v2894_v2 = vpop.permute.xlu0 %2893 }
 0x1f1   :  { %v1328_v52 = vsel %vm1318_vm5, %v1312_v41, %v2915_v21  ;;  %v2896_v15 = vunpack.i.h.bf16 %v2894_v2  ;;  %v2895_v54 = vunpack.i.l.bf16 %v2894_v2  ;;  %v1378_v27 = vsel %vm1318_vm5, %v1362_v58, %v2916_v17 }
 0x1f2   :  { %v2929_v56 = vpop.permute.xlu1 %2928 }
 0x1f3   :  { %v2930_v19 = vunpack.i.l.bf16 %v2929_v56  ;;  %v1393_v24 = vsel %vm1334_vm6, %v1377_v32, %v2895_v54  ;;  %v1345_v57 = vsel %vm1334_vm6, %v1328_v52, %v2896_v15  ;;  %v2931_v53 = vunpack.i.h.bf16 %v2929_v56 }
 0x1f4   :  { %1579 = vmatprep.mubr.f32.mxu1 %v1393_v24  ;;  %v2909_v14 = vpop.permute.xlu0 %2908 }
 0x1f5   :  { %v1313_v33 = vsel %vm1302_vm4, %v3741_v6, %v2930_v19  ;;  %v2910_v0 = vunpack.i.l.bf16 %v2909_v14  ;;  %1580 = vmatmul.mubr.f32.gmra.mxu1 %v1345_v57  ;;  %v2911_v29 = vunpack.i.h.bf16 %v2909_v14  ;;  %v1363_v43 = vsel %vm1302_vm4, %v3841_v34, %v2931_v53 }
 0x1f6   :  { %v2934_v63 = vpop.permute.xlu1 %2933 }
 0x1f7   :  { %v2936_v12 = vunpack.i.h.bf16 %v2934_v63  ;;  %v2935_v25 = vunpack.i.l.bf16 %v2934_v63  ;;  %v1329_v5 = vsel %vm1318_vm5, %v1313_v33, %v2910_v0  ;;  %v1379_v8 = vsel %vm1318_vm5, %v1363_v43, %v2911_v29  ;;  %v1964_v43 = vld [vmem:[%s4458_s3 + $0x1f0] sm:$0xff] }
 0x1f8   :  { %v2919_v22 = vpop.permute.xlu0 %2918 }
 0x1f9   :  { %v1394_v51 = vsel %vm1334_vm6, %v1378_v27, %v2935_v25  ;;  %v1346_v31 = vsel %vm1334_vm6, %v1329_v5, %v2936_v12  ;;  %v2920_v3 = vunpack.i.l.bf16 %v2919_v22  ;;  %v2921_v13 = vunpack.i.h.bf16 %v2919_v22 }
 0x1fa   :  { %1584 = vmatprep.mubr.f32.mxu1 %v1394_v51  ;;  %v2944_v36 = vpop.permute.xlu1 %2943 }
 0x1fb   :  { %v2945_v6 = vunpack.i.l.bf16 %v2944_v36  ;;  %1585 = vmatmul.mubr.f32.gmra.mxu1 %v1346_v31  ;;  %v1314_v45 = vsel %vm1302_vm4, %v3767_v62, %v2920_v3  ;;  %v2946_v41 = vunpack.i.h.bf16 %v2944_v36  ;;  %v1364_v62 = vsel %vm1302_vm4, %v3868_v60, %v2921_v13 }
 0x1fc   :  { %v2924_v49 = vpop.permute.xlu0 %2923 }
 0x1fd   :  { %v1330_v23 = vsel %vm1318_vm5, %v1314_v45, %v2945_v6  ;;  %v2926_v30 = vunpack.i.h.bf16 %v2924_v49  ;;  %v2925_v28 = vunpack.i.l.bf16 %v2924_v49  ;;  %v1380_v17 = vsel %vm1318_vm5, %v1364_v62, %v2946_v41  ;;  %v1948_v45 = vld [vmem:[%s4458_s3 + $0x170] sm:$0xff]  ;;  %v1941_v49 = vld [vmem:[%s4458_s3 + $0x138] sm:$0xff]  ;;  %v1931_v62 = vld [vmem:[%s4458_s3 + $0xe8] sm:$0xff] }
 0x1fe   :  { %v2954_v44 = vpop.permute.xlu1 %2953  ;;  %v1932_v41 = vld [vmem:[%s4458_s3 + $0xf0] sm:$0xff] }
 0x1ff   :  { %v2955_v21 = vunpack.i.l.bf16 %v2954_v44  ;;  %v1395_v38 = vsel %vm1334_vm6, %v1379_v8, %v2925_v28  ;;  %v1347_v2 = vsel %vm1334_vm6, %v1330_v23, %v2926_v30  ;;  %v2956_v32 = vunpack.i.h.bf16 %v2954_v44  ;;  %v1956_v23 = vld [vmem:[%s4458_s3 + $0x1b0] sm:$0xff]  ;;  %v1955_v28 = vld [vmem:[%s4458_s3 + $0x1a8] sm:$0xff]  ;;  %v1917_v8 = vld [vmem:[%s4458_s3 + $0x78] sm:$0xff] }
 0x200   :  { %1589 = vmatprep.mubr.f32.mxu1 %v1395_v38  ;;  %v2939_v34 = vpop.permute.xlu0 %2938  ;;  %v1940_v30 = vld [vmem:[%s4458_s3 + $0x130] sm:$0xff]  ;;  %v1939_v44 = vld [vmem:[%s4458_s3 + $0x128] sm:$0xff] }
 0x201   :  { %v1315_v52 = vsel %vm1302_vm4, %v3797_v4, %v2955_v21  ;;  %v2940_v15 = vunpack.i.l.bf16 %v2939_v34  ;;  %1590 = vmatmul.mubr.f32.gmra.mxu1 %v1347_v2  ;;  %v2941_v4 = vunpack.i.h.bf16 %v2939_v34  ;;  %v1365_v12 = vsel %vm1302_vm4, %v3883_v37, %v2956_v32  ;;  %v1965_v37 = vld [vmem:[%s4458_s3 + $0x1f8] sm:$0xff]  ;;  %v1916_v38 = vld [vmem:[%s4458_s3 + $0x70] sm:$0xff]  ;;  %v1954_v2 = vld [vmem:[%s4458_s3 + $0x1a0] sm:$0xff] }
 0x202   :  { %v2959_v54 = vpop.permute.xlu1 %2958  ;;  %2516 = vmatprep.subr.mxu0 %v1965_v37  ;;  %v1933_v21 = vld [vmem:[%s4458_s3 + $0xf8] sm:$0xff]  ;;  %v1938_v34 = vld [vmem:[%s4458_s3 + $0x120] sm:$0xff] }
 0x203   :  { %v2961_v56 = vunpack.i.h.bf16 %v2959_v54  ;;  %v2960_v19 = vunpack.i.l.bf16 %v2959_v54  ;;  %v1331_v24 = vsel %vm1318_vm5, %v1315_v52, %v2940_v15  ;;  %v1381_v3 = vsel %vm1318_vm5, %v1365_v12, %v2941_v4  ;;  %2481 = vmatprep.subr.mxu1 %v1933_v21  ;;  %v1915_v15 = vld [vmem:[%s4458_s3 + $0x68] sm:$0xff]  ;;  %v1930_v54 = vld [vmem:[%s4458_s3 + $0xe0] sm:$0xff]  ;;  %v1925_v12 = vld [vmem:[%s4458_s3 + $0xb8] sm:$0xff] }
 0x204   :  { %v2949_v57 = vpop.permute.xlu0 %2948  ;;  %v1926_v4 = vld [vmem:[%s4458_s3 + $0xc0] sm:$0xff] }
 0x205   :  { %v1396_v14 = vsel %vm1334_vm6, %v1380_v17, %v2960_v19  ;;  %v1348_v58 = vsel %vm1334_vm6, %v1331_v24, %v2961_v56  ;;  %v2951_v33 = vunpack.i.h.bf16 %v2949_v57  ;;  %v2950_v60 = vunpack.i.l.bf16 %v2949_v57  ;;  %v1914_v19 = vld [vmem:[%s4458_s3 + $0x60] sm:$0xff]  ;;  %v1929_v17 = vld [vmem:[%s4458_s3 + $0xd8] sm:$0xff]  ;;  %v1928_v57 = vld [vmem:[%s4458_s3 + $0xd0] sm:$0xff] }
 0x206   :  { %v1098_v0 = vpop.permute.xlu1 %1097  ;;  %1594 = vmatprep.mubr.f32.mxu1 %v1396_v14  ;;  %v1913_v24 = vld [vmem:[%s4458_s3 + $0x58] sm:$0xff]  ;;  %v1912_v14 = vld [vmem:[%s4458_s3 + $0x50] sm:$0xff]  ;;  %v1906_v37 = vld [vmem:[%s4458_s3 + $0x20] sm:$0xff] }
 0x207   :  { %1595 = vmatmul.mubr.f32.gmra.mxu1 %v1348_v58  ;;  %v1316_v63 = vsel %vm1302_vm4, %v3817_v10, %v2950_v60  ;;  %v1366_v25 = vsel %vm1302_vm4, %v3897_v18, %v2951_v33  ;;  %v1949_v18 = vld [vmem:[%s4458_s3 + $0x178] sm:$0xff]  ;;  %v1927_v58 = vld [vmem:[%s4458_s3 + $0xc8] sm:$0xff] }
 0x208   :  { %v2964_v53 = vpop.permute.xlu0 %2963  ;;  %v1332_v51 = vsel %vm1318_vm5, %v1316_v63, %v1098_v0  ;;  %v1382_v10 = vsel %vm1318_vm5, %v1366_v25, %v2865_v46  ;;  %2517 = vmatpush3.msra.mxu0 %v1949_v18  ;;  %v1953_v33 = vld [vmem:[%s4458_s3 + $0x198] sm:$0xff]  ;;  %v1911_v0 = vld [vmem:[%s4458_s3 + $0x48] sm:$0xff]  ;;  %v1910_v63 = vld [vmem:[%s4458_s3 + $0x40] sm:$0xff] }
 0x209   :  { %v2966_v27 = vunpack.i.h.bf16 %v2964_v53  ;;  %v2965_v5 = vunpack.i.l.bf16 %v2964_v53  ;;  %v1398_v6 = vsel %vm1334_vm6, %v1382_v10, %v2820_v42  ;;  %2518 = vmatprep.subr.mxu0 %v1964_v43  ;;  %v1957_v42 = vld [vmem:[%s4458_s3 + $0x1b8] sm:$0xff]  ;;  %v1924_v53 = vld [vmem:[%s4458_s3 + $0xb0] sm:$0xff]  ;;  %v1922_v10 = vld [vmem:[%s4458_s3 + $0xa0] sm:$0xff] }
 0x20a   :  { %v1055_v22 = vpop.permute.xlu1 %1054  ;;  %2519 = vmatpush3.msra.mxu0 %v1948_v45  ;;  %v1937_v60 = vld [vmem:[%s4458_s3 + $0x118] sm:$0xff]  ;;  %v1951_v18 = vld [vmem:[%s4458_s3 + $0x188] sm:$0xff]  ;;  %v1904_v45 = vld [vmem:[%s4458_s3 + $0x10] sm:$0xff] }
 0x20b   :  { %v1317_v31 = vsel %vm1302_vm4, %v3844_v7, %v1055_v22  ;;  %v1397_v36 = vsel %vm1334_vm6, %v1381_v3, %v2965_v5  ;;  %v1349_v29 = vsel %vm1334_vm6, %v1332_v51, %v2966_v27  ;;  %2520 = vmatprep.subr.mxu0 %v1963_v16  ;;  %v1909_v25 = vld [vmem:[%s4458_s3 + $0x38] sm:$0xff]  ;;  %v1908_v27 = vld [vmem:[%s4458_s3 + $0x30] sm:$0xff]  ;;  %v1923_v51 = vld [vmem:[%s4458_s3 + $0xa8] sm:$0xff] }
 0x20c   :  { %v1100_v7 = vpop.permute.xlu0 %1099  ;;  %1599 = vmatprep.mubr.f32.mxu1 %v1397_v36  ;;  %v1952_v5 = vld [vmem:[%s4458_s3 + $0x190] sm:$0xff]  ;;  %v1907_v3 = vld [vmem:[%s4458_s3 + $0x28] sm:$0xff]  ;;  %v1921_v36 = vld [vmem:[%s4458_s3 + $0x98] sm:$0xff] }
 0x20d   :  { %v1333_v1 = vsel %vm1318_vm5, %v1317_v31, %v1100_v7  ;;  %1600 = vmatmul.mubr.f32.gmra.mxu1 %v1349_v29  ;;  %v1936_v22 = vld [vmem:[%s4458_s3 + $0x110] sm:$0xff]  ;;  %v1935_v29 = vld [vmem:[%s4458_s3 + $0x108] sm:$0xff]  ;;  %v1934_v16 = vld [vmem:[%s4458_s3 + $0x100] sm:$0xff] }
 0x20e   :  { %v1147_v46 = vpop.permute.xlu1 %1146  ;;  %1604 = vmatprep.mubr.f32.mxu1 %v1398_v6  ;;  %v1920_v6 = vld [vmem:[%s4458_s3 + $0x90] sm:$0xff] }
 0x20f   :  { %v1350_v13 = vsel %vm1334_vm6, %v1333_v1, %v1147_v46  ;;  %v1905_v1 = vld [vmem:[%s4458_s3 + $0x18] sm:$0xff] }
 0x211   :  { %1605 = vmatmul.mubr.f32.gmra.mxu1 %v1350_v13  ;;  %v1950_v13 = vld [vmem:[%s4458_s3 + $0x180] sm:$0xff] }
 0x212   :  { %2682 = vmatprep.mubr.msk.f32.mxu1 %vm1302_vm4, %v3558_v40  ;;  %v1947_v40 = vld [vmem:[%s4458_s3 + $0x168] sm:$0xff] }
 0x213   :  { %2521 = vmatpush3.msra.mxu0 %v1947_v40  ;;  %v1919_v40 = vld [vmem:[%s4458_s3 + $0x88] sm:$0xff] }
 0x215   :  { %2683 = vmatmul.mubr.msk.f32.vlgmr.msra.gmra.mxu1 %vm1302_vm4, %v3622_v48  ;;  %v1946_v48 = vld [vmem:[%s4458_s3 + $0x160] sm:$0xff] }
 0x216   :  { %2685 = vmatprep.mubr.msk.f32.mxu1 %vm1302_vm4, %v3615_v61  ;;  %v1962_v61 = vld [vmem:[%s4458_s3 + $0x1e0] sm:$0xff]  ;;  %2482 = vmatpush3.msra.mxu1 %v1917_v8 }
 0x217   :  { %2522 = vmatprep.subr.mxu0 %v1962_v61  ;;  %2483 = vmatprep.subr.mxu1 %v1932_v41 }
 0x218   :  { %2523 = vmatpush3.msra.mxu0 %v1946_v48  ;;  %2484 = vmatpush3.msra.mxu1 %v1916_v38  ;;  %v1903_v48 = vld [vmem:[%s4458_s3 + $0x8] sm:$0xff] }
 0x219   :  { %2686 = vmatmul.mubr.msk.f32.gmra.mxu1 %vm1302_vm4, %v3676_v20  ;;  %v1945_v20 = vld [vmem:[%s4458_s3 + $0x158] sm:$0xff]  ;;  %2485 = vmatprep.subr.mxu1 %v1931_v62 }
 0x21a   :  { %2688 = vmatprep.mubr.msk.f32.mxu1 %vm1302_vm4, %v3660_v59  ;;  %v1961_v59 = vld [vmem:[%s4458_s3 + $0x1d8] sm:$0xff]  ;;  %2486 = vmatpush3.msra.mxu1 %v1915_v15 }
 0x21b   :  { %2524 = vmatprep.subr.mxu0 %v1961_v59  ;;  %2487 = vmatprep.subr.mxu1 %v1930_v54 }
 0x21c   :  { %2525 = vmatpush3.msra.mxu0 %v1945_v20  ;;  %2488 = vmatpush3.msra.mxu1 %v1914_v19  ;;  %v1918_v20 = vld [vmem:[%s4458_s3 + $0x80] sm:$0xff] }
 0x21d   :  { %2689 = vmatmul.mubr.msk.f32.gmra.mxu1 %vm1302_vm4, %v3716_v50  ;;  %v4469_v50 = vld [vmem:[#allocation5_spill] sm:$0xff]  ;;  %2489 = vmatprep.subr.mxu1 %v1929_v17 }
 0x21e   :  { %2691 = vmatprep.mubr.msk.f32.mxu1 %vm1302_vm4, %v3748_v11  ;;  %v4470_v11 = vld [vmem:[#allocation6_spill] sm:$0xff]  ;;  %2490 = vmatpush3.msra.mxu1 %v1913_v24 }
 0x21f   :  { %2491 = vmatprep.subr.mxu1 %v1928_v57 }
 0x220   :  { %2492 = vmatpush3.msra.mxu1 %v1912_v14 }
 0x221   :  { %2692 = vmatmul.mubr.msk.f32.gmra.mxu1 %vm1302_vm4, %v3445_v47  ;;  %2493 = vmatprep.subr.mxu1 %v1927_v58 }
 0x222   :  { %2694 = vmatprep.mubr.msk.f32.mxu1 %vm1302_vm4, %v3783_v35  ;;  %v1944_v35 = vld [vmem:[%s4458_s3 + $0x150] sm:$0xff]  ;;  %2494 = vmatpush3.msra.mxu1 %v1911_v0 }
 0x223   :  { %2495 = vmatprep.subr.mxu1 %v1926_v4 }
 0x224   :  { %2496 = vmatpush3.msra.mxu1 %v1910_v63 }
 0x225   :  { %2695 = vmatmul.mubr.msk.f32.gmra.mxu1 %vm1302_vm4, %v3775_v26  ;;  %v1960_v26 = vld [vmem:[%s4458_s3 + $0x1d0] sm:$0xff]  ;;  %2497 = vmatprep.subr.mxu1 %v1925_v12 }
 0x226   :  { %2697 = vmatprep.mubr.msk.f32.mxu1 %vm1302_vm4, %v3808_v39  ;;  %2526 = vmatprep.subr.mxu0 %v1960_v26  ;;  %v1959_v39 = vld [vmem:[%s4458_s3 + $0x1c8] sm:$0xff] }
 0x227   :  { %2527 = vmatpush3.msra.mxu0 %v1944_v35  ;;  %2498 = vmatpush3.msra.mxu1 %v1909_v25 }
 0x228   :  { %2528 = vmatprep.subr.mxu0 %v1959_v39  ;;  %2499 = vmatprep.subr.mxu1 %v1924_v53 }
 0x229   :  { %2698 = vmatmul.mubr.msk.f32.gmra.mxu1 %vm1302_vm4, %v3827_v55  ;;  %v1943_v55 = vld [vmem:[%s4458_s3 + $0x148] sm:$0xff] }
 0x22a   :  { %2700 = vmatprep.mubr.msk.f32.mxu1 %vm1302_vm4, %v3856_v9  ;;  %2529 = vmatpush3.msra.mxu0 %v1943_v55  ;;  %v1942_v9 = vld [vmem:[%s4458_s3 + $0x140] sm:$0xff] }
 0x22b   :  { %2500 = vmatpush3.msra.mxu1 %v1908_v27 }
 0x22c   :  { %2501 = vmatprep.subr.mxu1 %v1923_v51 }
 0x22d   :  { %2701 = vmatmul.mubr.msk.f32.gmra.mxu1 %vm1302_vm4, %v4469_v50  ;;  %v1902_v50 = vld [vmem:[%s4458_s3] sm:$0xff] }
 0x22e   :  { %2703 = vmatprep.mubr.msk.f32.mxu1 %vm1302_vm4, %v4470_v11  ;;  %2502 = vmatpush3.msra.mxu1 %v1907_v3  ;;  %v4471_v11 = vmov 0.0  }
 0x22f   :  { %2503 = vmatprep.subr.mxu1 %v1922_v10 }
 0x230   :  { %2504 = vmatpush3.msra.mxu1 %v1906_v37 }
 0x231   :  { %2704 = vmatmul.mubr.msk.f32.gmra.mxu1 %vm1302_vm4, %v3445_v47  ;;  %v1958_v47 = vld [vmem:[%s4458_s3 + $0x1c0] sm:$0xff]  ;;  %2505 = vmatprep.subr.mxu1 %v1921_v36 }
 0x232   :  { %2530 = vmatprep.subr.mxu0 %v1958_v47  ;;  %2506 = vmatpush3.msra.mxu1 %v1905_v1 }
 0x233   :  { %2531 = vmatpush3.msra.mxu0 %v1942_v9  ;;  %2507 = vmatprep.subr.mxu1 %v1920_v6 }
 0x234   :  { %2532 = vmatprep.subr.mxu0 %v1957_v42  ;;  %2508 = vmatpush3.msra.mxu1 %v1904_v45 }
 0x235   :  { %2533 = vmatpush3.msra.mxu0 %v1941_v49  ;;  %2509 = vmatprep.subr.mxu1 %v1919_v40 }
 0x236   :  { %2534 = vmatprep.subr.mxu0 %v1956_v23  ;;  %2510 = vmatpush3.msra.mxu1 %v1903_v48 }
 0x237   :  { %2535 = vmatpush3.msra.mxu0 %v1940_v30  ;;  %2511 = vmatprep.subr.mxu1 %v1918_v20 }
 0x238   :  { %2536 = vmatprep.subr.mxu0 %v1955_v28  ;;  %2512 = vmatpush3.msra.mxu1 %v1902_v50 }
 0x239   :  { %2537 = vmatpush3.msra.mxu0 %v1939_v44  ;;  %2706 = vmatprep.subr.mxu1 %v4471_v11 }
 0x23a   :  { %2538 = vmatprep.subr.mxu0 %v1954_v2 }
 0x23b   :  { %2539 = vmatpush3.msra.mxu0 %v1938_v34 }
 0x23c   :  { %2540 = vmatprep.subr.mxu0 %v1953_v33 }
 0x23d   :  { %2541 = vmatpush3.msra.mxu0 %v1937_v60 }
 0x23e   :  { %2542 = vmatprep.subr.mxu0 %v1952_v5 }
 0x23f   :  { %2543 = vmatpush3.msra.mxu0 %v1936_v22 }
 0x240   :  { %2544 = vmatprep.subr.mxu0 %v1951_v18 }
 0x241   :  { %2545 = vmatpush3.msra.mxu0 %v1935_v29 }
 0x242   :  { %2546 = vmatprep.subr.mxu0 %v1950_v13 }
 0x243   :  { %2547 = vmatpush3.msra.mxu0 %v1934_v16 }
 0x278   :  { %v2413_v52 = vpop.f32.mrf.mxu1 }
 0x27a   :  { %v2414_v56 = vpop.f32.mrf.mxu1 }
 0x27b   :  { %v4201_v32 = vadd.f32 %v2414_v56, %v2413_v52 }
 0x287   :  { %v2416_v31 = vpop.f32.mrf.mxu1 }
 0x289   :  { %v2417_v7 = vpop.f32.mrf.mxu1 }
 0x28a   :  { %v2418_v46 = vadd.f32 %v2417_v7, %v2416_v31 }
 0x28b   :  { %v2419_v43 = vpop.f32.mrf.mxu1 }
 0x28d   :  { %v2420_v61 = vpop.f32.mrf.mxu1 }
 0x28e   :  { %v2421_v59 = vadd.f32 %v2420_v61, %v2419_v43 }
 0x297   :  { %v2422_v26 = vpop.f32.mrf.mxu1 }
 0x299   :  { %v2423_v35 = vpop.f32.mrf.mxu1 }
 0x29a   :  { %v2424_v39 = vadd.f32 %v2423_v35, %v2422_v26 }
 0x29b   :  { %v2425_v55 = vpop.f32.mrf.mxu1 }
 0x29d   :  { %v2426_v47 = vpop.f32.mrf.mxu1 }
 0x29e   :  { %v2427_v9 = vadd.f32 %v2426_v47, %v2425_v55 }
 0x29f   :  { %v2428_v42 = vpop.f32.mrf.mxu1 }
 0x2a1   :  { %v2429_v49 = vpop.f32.mrf.mxu1 }
 0x2a2   :  { %v2430_v23 = vadd.f32 %v2429_v49, %v2428_v42 }
 0x2a3   :  { %v2431_v30 = vpop.f32.mrf.mxu1 }
 0x2a5   :  { %v2432_v28 = vpop.f32.mrf.mxu1 }
 0x2a6   :  { %v2433_v44 = vadd.f32 %v2432_v28, %v2431_v30 }
 0x2a7   :  { %v2434_v21 = vpop.f32.mrf.mxu1 }
 0x2a9   :  { %v2435_v8 = vpop.f32.mrf.mxu1 }
 0x2aa   :  { %v2436_v29 = vadd.f32 %v2435_v8, %v2434_v21 }
 0x2ab   :  { %v2437_v41 = vpop.f32.mrf.mxu1 }
 0x2ad   :  { %v2438_v38 = vpop.f32.mrf.mxu1 }
 0x2af   :  { %v2440_v2 = vpop.f32.mrf.mxu1 }
 0x2b1   :  { %v2441_v34 = vpop.f32.mrf.mxu1 }
 0x2b2   :  { %v2442_v55 = vadd.f32 %v2441_v34, %v2440_v2 }
 0x2b5   :  { %v4300_v62 = vpop.f32.mrf.mxu1 }
 0x2b7   :  { %v4302_v52 = vpop.f32.mrf.mxu1 }
 0x2bb   :  { %v4304_v15 = vpop.f32.mrf.mxu1 }
 0x2bd   :  { %v4306_v54 = vpop.f32.mrf.mxu1 }
 0x2be   :  { %v2448_v34 = vadd.f32 %v4306_v54, %v4304_v15 }
 0x2c1   :  { %v4308_v56 = vpop.f32.mrf.mxu1 }
 0x2c3   :  { %v4310_v19 = vpop.f32.mrf.mxu1 }
 0x2c7   :  { %v4312_v17 = vpop.f32.mrf.mxu1 }
 0x2c9   :  { %v4314_v24 = vpop.f32.mrf.mxu1 }
 0x2cd   :  { %v4316_v57 = vpop.f32.mrf.mxu1 }
 0x2cf   :  { %v4318_v14 = vpop.f32.mrf.mxu1 }
 0x2d1   :  { %v4320_v58 = vpop.f32.mrf.mxu1 }
 0x2d3   :  { %v4322_v33 = vpop.f32.mrf.mxu1 }
 0x2d5   :  { %v2684_v60 = vpop.f32.mrf.mxu1 }
 0x2d6   :  { %v1682_v0 = vadd.f32 %v2684_v60, %v2418_v46 }
 0x2d7   :  { %v1676_v4 = vpop.f32.mrf.mxu1 }
 0x2d8   :  { %v1677_v63 = vadd.f32 %v4201_v32, %v1676_v4  ;;  %v1756_v12 = vmax.f32 %v1682_v0, 0.0 }
 0x2d9   :  { %v2687_v25 = vpop.f32.mrf.mxu1 }
 0x2da   :  { %v1692_v53 = vadd.f32 %v2687_v25, %v2424_v39  ;;  %v1755_v5 = vmax.f32 %v1677_v63, 0.0  ;;  %v1773_v31 = vsel %vm1771_vm7, %v1756_v12, -inf  ;;  %v1802_v3 = vsel %vm1800_vm8, %v1756_v12, -inf }
 0x2db   :  { %v1686_v27 = vpop.f32.mrf.mxu1  ;;  %v2439_v39 = vadd.f32 %v2438_v38, %v2437_v41 }
 0x2dc   :  { %v1758_v22 = vmax.f32 %v1692_v53, 0.0  ;;  %v1687_v51 = vadd.f32 %v2421_v59, %v1686_v27  ;;  %v1772_v6 = vsel %vm1771_vm7, %v1755_v5, -inf  ;;  %v1801_v43 = vsel %vm1800_vm8, %v1755_v5, -inf }
 0x2dd   :  { %v2690_v10 = vpop.f32.mrf.mxu1 }
 0x2de   :  { %v1776_v37 = vsel %vm1771_vm7, %v1758_v22, -inf  ;;  %v1805_v18 = vsel %vm1800_vm8, %v1758_v22, -inf  ;;  %v1757_v36 = vmax.f32 %v1687_v51, 0.0  ;;  %v1702_v32 = vadd.f32 %v2690_v10, %v2430_v23 }
 0x2df   :  { %v1777_v7 = vmax.f32 %v1773_v31, %v1776_v37  ;;  %v1806_v1 = vmax.f32 %v1802_v3, %v1805_v18  ;;  %v1696_v46 = vpop.f32.mrf.mxu1  ;;  %v2445_v51 = vadd.f32 %v4302_v52, %v4300_v62  ;;  %v2454_v10 = vadd.f32 %v4314_v24, %v4312_v17 }
 0x2e0   :  { %v1774_v45 = vsel %vm1771_vm7, %v1757_v36, -inf  ;;  %v1803_v13 = vsel %vm1800_vm8, %v1757_v36, -inf  ;;  %v1760_v61 = vmax.f32 %v1702_v32, 0.0  ;;  %v1697_v48 = vadd.f32 %v2427_v9, %v1696_v46 }
 0x2e1   :  { %v1775_v16 = vmax.f32 %v1772_v6, %v1774_v45  ;;  %v1804_v40 = vmax.f32 %v1801_v43, %v1803_v13  ;;  %v2693_v59 = vpop.f32.mrf.mxu1  ;;  %v2457_v46 = vadd.f32 %v4318_v14, %v4316_v57  ;;  %v2460_v17 = vadd.f32 %v4322_v33, %v4320_v58 }
 0x2e2   :  { %v1712_v20 = vadd.f32 %v2693_v59, %v2436_v29  ;;  %v1830_v30 = vsel %vm1771_vm7, %v1760_v61, -inf  ;;  %v1759_v28 = vmax.f32 %v1697_v48, 0.0  ;;  %v1858_v9 = vsel %vm1800_vm8, %v1760_v61, -inf }
 0x2e3   :  { %v1778_v50 = vmax.f32 %v1775_v16, %v1777_v7  ;;  %v1807_v26 = vmax.f32 %v1804_v40, %v1806_v1  ;;  %v1706_v35 = vpop.f32.mrf.mxu1  ;;  %v2451_v1 = vadd.f32 %v4310_v19, %v4308_v56 }
 0x2e4   :  { %v1762_v47 = vmax.f32 %v1712_v20, 0.0  ;;  %v1707_v42 = vadd.f32 %v2433_v44, %v1706_v35  ;;  %v1829_v25 = vsel %vm1771_vm7, %v1759_v28, -inf  ;;  %v1857_v53 = vsel %vm1800_vm8, %v1759_v28, -inf }
 0x2e5   :  { %v1786_v49 = vsel %vm1771_vm7, %v1778_v50, -inf  ;;  %v1815_v23 = vsel %vm1800_vm8, %v1807_v26, -inf  ;;  %v2696_v21 = vpop.f32.mrf.mxu1 }
 0x2e6   :  { %v1787_v8 = vrot.slane %v1786_v49, 4  ;;  %v1833_v60 = vsel %vm1771_vm7, %v1762_v47, -inf  ;;  %v1861_v0 = vsel %vm1800_vm8, %v1762_v47, -inf  ;;  %v1761_v38 = vmax.f32 %v1707_v42, 0.0 }
 0x2e7   :  { %v1834_v4 = vmax.f32 %v1830_v30, %v1833_v60  ;;  %v1862_v41 = vmax.f32 %v1858_v9, %v1861_v0  ;;  %v1722_v2 = vadd.f32 %v2696_v21, %v2442_v55  ;;  %v1716_v44 = vpop.f32.mrf.mxu1  ;;  %v1816_v63 = vrot.slane %v1815_v23, 4 }
 0x2e8   :  { %v1717_v12 = vadd.f32 %v2439_v39, %v1716_v44  ;;  %v1831_v27 = vsel %vm1771_vm7, %v1761_v38, -inf  ;;  %v1859_v5 = vsel %vm1800_vm8, %v1761_v38, -inf  ;;  %v1788_v15 = vmax.f32 %v1786_v49, %v1787_v8 }
 0x2e9   :  { %v2699_v22 = vpop.f32.mrf.mxu1  ;;  %v1832_v31 = vmax.f32 %v1829_v25, %v1831_v27  ;;  %v1860_v3 = vmax.f32 %v1857_v53, %v1859_v5  ;;  %v1764_v54 = vmax.f32 %v1722_v2, 0.0  ;;  %v1817_v36 = vmax.f32 %v1815_v23, %v1816_v63 }
 0x2ea   :  { %v1732_v37 = vadd.f32 %v2699_v22, %v2448_v34  ;;  %v1763_v7 = vmax.f32 %v1717_v12, 0.0  ;;  %v1789_v13 = vrot.slane %v1788_v15, 2 }
 0x2eb   :  { %v1726_v18 = vpop.f32.mrf.mxu1  ;;  %v1835_v32 = vmax.f32 %v1832_v31, %v1834_v4  ;;  %v1863_v29 = vmax.f32 %v1860_v3, %v1862_v41  ;;  %v1780_v16 = vsel %vm1771_vm7, %v1764_v54, -inf  ;;  %v1809_v40 = vsel %vm1800_vm8, %v1764_v54, -inf }
 0x2ec   :  { %v1766_v62 = vmax.f32 %v1732_v37, 0.0  ;;  %v1727_v52 = vadd.f32 %v2445_v51, %v1726_v18  ;;  %v1779_v57 = vsel %vm1771_vm7, %v1763_v7, -inf  ;;  %v1818_v48 = vrot.slane %v1817_v36, 2 }
 0x2ed   :  { %v2702_v6 = vpop.f32.mrf.mxu1  ;;  %v1843_v24 = vsel %vm1771_vm7, %v1835_v32, -inf  ;;  %v1871_v43 = vsel %vm1800_vm8, %v1863_v29, -inf  ;;  %v1808_v59 = vsel %vm1800_vm8, %v1763_v7, -inf  ;;  %v1790_v28 = vmax.f32 %v1788_v15, %v1789_v13 }
 0x2ee   :  { %v1742_v45 = vadd.f32 %v2702_v6, %v2454_v10  ;;  %v1783_v56 = vsel %vm1771_vm7, %v1766_v62, -inf  ;;  %v1812_v14 = vsel %vm1800_vm8, %v1766_v62, -inf  ;;  %v1765_v61 = vmax.f32 %v1727_v52, 0.0 }
 0x2ef   :  { %v1736_v19 = vpop.f32.mrf.mxu1  ;;  %v1844_v58 = vrot.slane %v1843_v24, 4  ;;  %v1872_v33 = vrot.slane %v1871_v43, 4  ;;  %v1784_v26 = vmax.f32 %v1780_v16, %v1783_v56  ;;  %v1813_v47 = vmax.f32 %v1809_v40, %v1812_v14 }
 0x2f0   :  { %v1737_v20 = vadd.f32 %v2451_v1, %v1736_v19  ;;  %v1781_v35 = vsel %vm1771_vm7, %v1765_v61, -inf  ;;  %v1810_v39 = vsel %vm1800_vm8, %v1765_v61, -inf  ;;  %v1768_v55 = vmax.f32 %v1742_v45, 0.0 }
 0x2f1   :  { %v2705_v50 = vpop.f32.mrf.mxu1  ;;  %v1782_v42 = vmax.f32 %v1779_v57, %v1781_v35  ;;  %v1811_v49 = vmax.f32 %v1808_v59, %v1810_v39  ;;  %v1819_v9 = vmax.f32 %v1817_v36, %v1818_v48  ;;  %v1845_v60 = vmax.f32 %v1843_v24, %v1844_v58  ;;  %v2129_v39 = vld [vmem:[%s4460_s5 + $0x78] sm:$0xff] }
 0x2f2   :  { %v1767_v23 = vmax.f32 %v1737_v20, 0.0  ;;  %v1752_v21 = vadd.f32 %v2705_v50, %v2460_v17  ;;  %v1873_v0 = vmax.f32 %v1871_v43, %v1872_v33  ;;  %v1837_v38 = vsel %vm1771_vm7, %v1768_v55, -inf }
 0x2f3   :  { %v1746_v30 = vpop.f32.mrf.mxu1  ;;  %v1785_v4 = vmax.f32 %v1782_v42, %v1784_v26  ;;  %v1814_v41 = vmax.f32 %v1811_v49, %v1813_v47  ;;  %v1865_v2 = vsel %vm1800_vm8, %v1768_v55, -inf  ;;  %v1820_v62 = vrot.slane %v1819_v9, 1 }
 0x2f4   :  { %v1747_v8 = vadd.f32 %v2457_v46, %v1746_v30  ;;  %v1770_v44 = vmax.f32 %v1752_v21, 0.0  ;;  %v1836_v25 = vsel %vm1771_vm7, %v1767_v23, -inf  ;;  %v1864_v53 = vsel %vm1800_vm8, %v1767_v23, -inf  ;;  %v2128_v23 = vld [vmem:[%s4460_s5 + $0x70] sm:$0xff]  ;;  %v2127_v21 = vld [vmem:[%s4460_s5 + $0x68] sm:$0xff] }
 0x2f5   :  { %v1793_v63 = vsel %vm1771_vm7, %v1785_v4, -inf  ;;  %v1822_v12 = vsel %vm1800_vm8, %v1814_v41, -inf  ;;  %v1846_v46 = vrot.slane %v1845_v60, 2  ;;  %v1791_v52 = vrot.slane %v1790_v28, 1  ;;  %v2126_v4 = vld [vmem:[%s4460_s5 + $0x60] sm:$0xff] }
 0x2f6   :  { %v1769_v34 = vmax.f32 %v1747_v8, 0.0  ;;  %v1794_v27 = vrot.slane %v1793_v63, 4  ;;  %v1823_v5 = vrot.slane %v1822_v12, 4  ;;  %v1840_v22 = vsel %vm1771_vm7, %v1770_v44, -inf }
 0x2f7   :  { %v1868_v51 = vsel %vm1800_vm8, %v1770_v44, -inf  ;;  %v1841_v31 = vmax.f32 %v1837_v38, %v1840_v22  ;;  %v1874_v6 = vrot.slane %v1873_v0, 2  ;;  %v1847_v19 = vmax.f32 %v1845_v60, %v1846_v46  ;;  %v2124_v44 = vld [vmem:[%s4460_s5 + $0x50] sm:$0xff] }
 0x2f8   :  { %v1869_v3 = vmax.f32 %v1865_v2, %v1868_v51  ;;  %v1838_v10 = vsel %vm1771_vm7, %v1769_v34, -inf  ;;  %v1866_v15 = vsel %vm1800_vm8, %v1769_v34, -inf  ;;  %v1795_v54 = vmax.f32 %v1793_v63, %v1794_v27  ;;  %v2125_v2 = vld [vmem:[%s4460_s5 + $0x58] sm:$0xff]  ;;  %v2123_v34 = vld [vmem:[%s4460_s5 + $0x48] sm:$0xff]  ;;  %v2122_v63 = vld [vmem:[%s4460_s5 + $0x40] sm:$0xff] }
 0x2f9   :  { %v1824_v37 = vmax.f32 %v1822_v12, %v1823_v5  ;;  %v1839_v18 = vmax.f32 %v1836_v25, %v1838_v10  ;;  %v1867_v36 = vmax.f32 %v1864_v53, %v1866_v15  ;;  %v1875_v61 = vmax.f32 %v1873_v0, %v1874_v6  ;;  %v2121_v12 = vld [vmem:[%s4460_s5 + $0x38] sm:$0xff]  ;;  %v2120_v25 = vld [vmem:[%s4460_s5 + $0x30] sm:$0xff]  ;;  %v2119_v53 = vld [vmem:[%s4460_s5 + $0x28] sm:$0xff] }
 0x2fa   :  { %v1796_v32 = vrot.slane %v1795_v54, 2  ;;  %v1821_v48 = vmax.f32 %v1819_v9, %v1820_v62  ;;  %v1792_v33 = vmax.f32 %v1790_v28, %v1791_v52  ;;  %v1848_v49 = vrot.slane %v1847_v19, 1  ;;  %v2118_v27 = vld [vmem:[%s4460_s5 + $0x20] sm:$0xff]  ;;  %v2117_v5 = vld [vmem:[%s4460_s5 + $0x18] sm:$0xff]  ;;  %v2116_v22 = vld [vmem:[%s4460_s5 + $0x10] sm:$0xff] }
 0x2fb   :  { %v1842_v29 = vmax.f32 %v1839_v18, %v1841_v31  ;;  %v1870_v7 = vmax.f32 %v1867_v36, %v1869_v3  ;;  %v1825_v1 = vrot.slane %v1824_v37, 2  ;;  %v1876_v47 = vrot.slane %v1875_v61, 1  ;;  %v2115_v51 = vld [vmem:[%s4460_s5 + $0x8] sm:$0xff]  ;;  %v2114_v31 = vld [vmem:[%s4460_s5] sm:$0xff] }
 0x2fc   :  { %v1797_v17 = vmax.f32 %v1795_v54, %v1796_v32  ;;  %v1849_v60 = vmax.f32 %v1847_v19, %v1848_v49  ;;  %v2310_v54 = vld [vmem:[%s4459_s4] ss:$0 sm:$0xff]  ;;  %v2207_v62 = vlaneseq  ;;  %s2996_s4 = smov [#allocation2]  }
 0x2fd   :  { %v1850_v24 = vsel %vm1771_vm7, %v1842_v29, -inf  ;;  %v1878_v43 = vsel %vm1800_vm8, %v1870_v7, -inf  ;;  %v1826_v45 = vmax.f32 %v1824_v37, %v1825_v1  ;;  %v1877_v8 = vmax.f32 %v1875_v61, %v1876_v47  ;;  %v2311_v1 = vld [vmem:[%s4461_s6] ss:$0 sm:$0xff]  ;;  %s2222_s21 = sshll.u32 %s2996_s4, 4  ;;  %s2223_s21 = int_to_ptr.vmem [resolvable:$true] %s2222_s21 }
 0x2fe   :  { %v1851_v13 = vrot.slane %v1850_v24, 4  ;;  %v1879_v16 = vrot.slane %v1878_v43, 4  ;;  %v1798_v56 = vrot.slane %v1797_v17, 1  ;;  %s2969_s22 = scalar_lea.vmem %s2223_s21, 32  ;;  %p2974_p1 = scmp.lt.s32.totalorder %s2223_s21, %s2223_s21 }
 0x2ff   :  { %v1827_v40 = vrot.slane %v1826_v45, 1  ;;  %p2970_p0 = scmp.ne.s32.totalorder %s2223_s21, %s2969_s22  ;;  %p2975_p2 = scmp.lt.s32.totalorder %s2969_s22, %s2969_s22 }
 0x300   :  { %v1852_v57 = vmax.f32 %v1850_v24, %v1851_v13  ;;  %v1880_v14 = vmax.f32 %v1878_v43, %v1879_v16  ;;  %v1799_v59 = vmax.f32 %v1797_v17, %v1798_v56  ;;  %v2208_v17 = vand.u32 127, %v2207_v62 }
 0x301   :  { %v1828_v58 = vmax.f32 %v1826_v45, %v1827_v40  ;;  %p2976_p3 = por %p2975_p2, %p2974_p1 }
 0x302   :  { %v1853_v20 = vrot.slane %v1852_v57, 2  ;;  %v1881_v50 = vrot.slane %v1880_v14, 2  ;;  %v1888_v35 = vsel %vm1887_vm9, %v1799_v59, %v1792_v33  ;;  %vm2210_vm11 = vcmp.eq.s32.totalorder %v2208_v17, 1 }
 0x303   :  { %v1892_v26 = vsel %vm1887_vm9, %v1828_v58, %v1821_v48  ;;  %vm2209_vm12 = vcmp.eq.s32.totalorder %v2208_v17, 0  ;;  %v2211_v24 = vsel %vm2210_vm11, 180.0, %v4471_v11  ;;  %p2977_p4 = pnand %p2976_p3, %p2970_p0 }
 0x304   :  { %v1854_v55 = vmax.f32 %v1852_v57, %v1853_v20  ;;  %2037 = vmatprep.mubr.f32.mxu1 %v1892_v26  ;;  %v1882_v42 = vmax.f32 %v1880_v14, %v1881_v50  ;;  %v2212_v43 = vsel %vm2209_vm12, 90.0, %v2211_v24 }
 0x305   :  { %2038 = vmatmul.mubr.f32.vlgmr.msra.gmra.mxu1 %v1888_v35 }
 0x306   :  { %v1883_v30 = vrot.slane %v1882_v42, 1  ;;  %v1855_v28 = vrot.slane %v1854_v55, 1  ;;  %2707 = vmatpush3.msra.mxu1 %v2129_v39  ;;  %2738 = vmatprep.mubr.msk.f32.mxu1 %vm2995_vm10, %v4471_v11 }
 0x307   :  { %2708 = vmatprep.subr.mxu1 %v4471_v11 }
 0x308   :  { %v1884_v9 = vmax.f32 %v1882_v42, %v1883_v30  ;;  %v1856_v0 = vmax.f32 %v1854_v55, %v1855_v28  ;;  %2709 = vmatpush3.msra.mxu1 %v2128_v23 }
 0x309   :  { %2710 = vmatprep.subr.mxu1 %v4471_v11 }
 0x30a   :  { %v1900_v41 = vsel %vm1887_vm9, %v1884_v9, %v1877_v8  ;;  %v1896_v38 = vsel %vm1887_vm9, %v1856_v0, %v1849_v60  ;;  %2711 = vmatpush3.msra.mxu1 %v2127_v21 }
 0x30b   :  { %2107 = vmatprep.mubr.f32.mxu0 %v1900_v41  ;;  %2712 = vmatprep.subr.mxu1 %v4471_v11 }
 0x30c   :  { %2108 = vmatmul.mubr.f32.vlgmr.msra.gmra.mxu0 %v1896_v38  ;;  %2713 = vmatpush3.msra.mxu1 %v2126_v4 }
 0x30d   :  { %2714 = vmatprep.subr.mxu1 %v4471_v11 }
 0x30e   :  { %2715 = vmatpush3.msra.mxu1 %v2125_v2 }
 0x30f   :  { %2716 = vmatprep.subr.mxu1 %v4471_v11 }
 0x310   :  { %2717 = vmatpush3.msra.mxu1 %v2124_v44 }
 0x311   :  { %2718 = vmatprep.subr.mxu1 %v4471_v11 }
 0x312   :  { %2719 = vmatpush3.msra.mxu1 %v2123_v34 }
 0x313   :  { %2720 = vmatprep.subr.mxu1 %v4471_v11 }
 0x314   :  { %2721 = vmatpush3.msra.mxu1 %v2122_v63 }
 0x315   :  { %2722 = vmatprep.subr.mxu1 %v4471_v11 }
 0x316   :  { %2723 = vmatpush3.msra.mxu1 %v2121_v12 }
 0x317   :  { %2724 = vmatprep.subr.mxu1 %v4471_v11 }
 0x318   :  { %2725 = vmatpush3.msra.mxu1 %v2120_v25 }
 0x319   :  { %2726 = vmatprep.subr.mxu1 %v4471_v11 }
 0x31a   :  { %2727 = vmatpush3.msra.mxu1 %v2119_v53 }
 0x31b   :  { %2728 = vmatprep.subr.mxu1 %v4471_v11 }
 0x31c   :  { %2729 = vmatpush3.msra.mxu1 %v2118_v27 }
 0x31d   :  { %2730 = vmatprep.subr.mxu1 %v4471_v11 }
 0x31e   :  { %2731 = vmatpush3.msra.mxu1 %v2117_v5 }
 0x31f   :  { %2732 = vmatprep.subr.mxu1 %v4471_v11 }
 0x320   :  { %2733 = vmatpush3.msra.mxu1 %v2116_v22 }
 0x321   :  { %2734 = vmatprep.subr.mxu1 %v4471_v11 }
 0x322   :  { %2735 = vmatpush3.msra.mxu1 %v2115_v51 }
 0x323   :  { %2736 = vmatprep.subr.mxu1 %v4471_v11 }
 0x324   :  { %2737 = vmatpush3.msra.mxu1 %v2114_v31 }
 0x3c5   :  { %v2513_v3 = vpop.f32.mrf.mxu1 }
 0x3c7   :  { %v2514_v10 = vpop.f32.mrf.mxu1 }
 0x3c8   :  { %v2515_v15 = vadd.f32 %v2514_v10, %v2513_v3 }
 0x3ca   :  { %v2040_v36 = vadd.f32 %v2515_v15, %v2310_v54 }
 0x3cc   :  { %v2548_v37 = vpop.f32.mrf.mxu0 }
 0x3ce   :  { %v2549_v18 = vpop.f32.mrf.mxu0 }
 0x3cf   :  { %v2550_v32 = vadd.f32 %v2549_v18, %v2548_v37 }
 0x3d1   :  { %v2110_v29 = vadd.f32 %v2550_v32, %v2040_v36 }
 0x3d3   :  { %v2113_v7 = vmax.f32 %v2110_v29, 0.0 }
 0x3d5   :  { %2739 = vmatmul.mubr.f32.vlgmr.msra.gmra.mxu1 %v2113_v7 }
 0x495   :  { %v2203_v46 = vpop.f32.mrf.mxu1 }
 0x496   :  { %v2204_v52 = vadd.f32 %v2311_v1, %v2203_v46 }
 0x497   :  { %v2740_v6 = vpop.f32.mrf.mxu1 }
 0x498   :  { %2967 = vtanh.f32 %v2204_v52 }
 0x4a5   :  { %v2968_v45 = vpop.eup %2967 }
 0x4a6   :  { %v2214_v13 = vmul.f32 %v2968_v45, %v2212_v43 }
 0x4a8   :  { %2215 = vst [vmem:[#allocation2] sm:$0x3] %v2214_v13 }
 0x4a9   :  { %2980 = shalt.err (!%p2977_p4)
}
 0x4aa   :  { %2225 = dma.vmem_to_hbm [thread:$0]  %s2223_s21, 32, %s4462_s7, [#allocation3]  }
 0x4ab   :  { %2989 = dma.done.wait [#allocation3], 32  }
 0x4ac   :  { %2990 = vsyncadd [#allocation3], 4294967264 }
 0x4ad   :  { %2229 = vsyncpa [#allocation3], 1 }

</bundles_post_ra>
